<compile_context>
chip_gen: v7x
topology: tpu7x:2x2x1
jax: 0.10.0
libtpu: 0.0.40
codegen_flags: <defaults>
</compile_context>

<pallas_src>
import jax
import jax.numpy as jnp
from jax.experimental import pallas as pl
from jax.experimental.pallas import tpu as pltpu


# ----------------------------- kernel ---------------------------------------


def _mlp_kernel(x_ref, w1_ref, b1_ref, w2_ref, b2_ref, w3_ref, b3_ref, o_ref):
    """3-layer MLP on one (tile_rows, folded_feature) block.

    Matmuls accumulate in f32 on the MXU; bias-add / ReLU stay f32 on the VPU
    (v5e has no bf16 elementwise support).
    """
    wdt = w1_ref.dtype
    x = x_ref[...]
    h = jnp.dot(x, w1_ref[...], preferred_element_type=jnp.float32) + b1_ref[...]
    h = jnp.maximum(h, 0.0)
    h = jnp.dot(h.astype(wdt), w2_ref[...], preferred_element_type=jnp.float32) + b2_ref[...]
    h = jnp.maximum(h, 0.0)
    o = jnp.dot(h.astype(wdt), w3_ref[...], preferred_element_type=jnp.float32) + b3_ref[...]
    o_ref[...] = o.astype(o_ref.dtype)


# ----------------------------- host helpers ---------------------------------


def _cdiv(a, b):
    return (a + b - 1) // b


def _round_up(a, b):
    return _cdiv(a, b) * b


def _block_diag(w, f):
    """(in, out) -> (f*in, f*out) block-diagonal replication of w."""
    in_d, out_d = w.shape
    eye = jnp.eye(f, dtype=w.dtype)
    return (eye[:, None, :, None] * w[None, :, None, :]).reshape(f * in_d, f * out_d)


def _xla_reference(x2d, params):
    h = jnp.maximum(x2d @ params["w1"] + params["b1"], 0.0)
    h = jnp.maximum(h @ params["w2"] + params["b2"], 0.0)
    return h @ params["w3"] + params["b3"]


def traff_net_reg_forward(
    x,
    params,
    *,
    fold=32,                     # batch rows folded into the lane dim (use 16 on v5e if MXU-bound)
    tile_rows=2048,              # folded rows per grid step (multiple of 8); amortizes step overhead
    compute_dtype=jnp.bfloat16,  # MXU operand dtype; f32 accumulation is kept
    out_dtype=jnp.float32,       # pass jnp.bfloat16 to halve output HBM bytes when HBM-bound
    min_grid_steps=8,            # keep >= ~8 grid steps so "parallel" can use both v7x TCs
    use_pallas=None,             # None -> auto dispatch on batch size
):
    """Forward pass matching traff_net_reg.forward (flatten -> fc MLP)."""
    # nn.Flatten() -> (batch, -1)
    x2d = x.reshape(x.shape[0], -1).astype(jnp.float32)
    b = x2d.shape[0]
    seq_len, hid_dim = params["w1"].shape
    out_dim = params["w3"].shape[1]

    if x2d.shape[1] != seq_len:
        # Inherited limitation of the PyTorch module: fc's fan_in is seq_len,
        # so flatten(x) must have width seq_len (i.e. inp_dim == 1).
        raise ValueError(
            f"flatten(x) width {x2d.shape[1]} != fc fan_in {seq_len}; "
            "traff_net_reg.forward requires inp_dim == 1"
        )

    if use_pallas is None:
        # Pallas only wins once the batch fills several grid steps; below that
        # the fused-XLA path is strictly faster (dispatch + block-diag build).
        use_pallas = b >= fold * tile_rows
    if not use_pallas:
        return _xla_reference(x2d, params)

    cdt = jnp.dtype(compute_dtype)
    odt = jnp.dtype(out_dtype)

    # ---- lane-dense folding: pack `fold` batch rows into the lane dim ------
    # Pad only to a multiple of 8*fold rows (NOT to a full tile) and let
    # Pallas handle the ragged last grid block.
    b_pad = _round_up(b, 8 * fold)
    if b_pad > b:
        x2d = jnp.pad(x2d, ((0, b_pad - b), (0, 0)))
    bf = b_pad // fold                            # folded rows (multiple of 8)
    xf = x2d.reshape(bf, fold * seq_len).astype(cdt)

    f_in, f_hid, f_out = fold * seq_len, fold * hid_dim, fold * out_dim

    w1 = _block_diag(params["w1"].astype(cdt), fold)   # (F*seq, F*hid)
    w2 = _block_diag(params["w2"].astype(cdt), fold)   # (F*hid, F*hid)
    w3 = _block_diag(params["w3"].astype(cdt), fold)   # (F*hid, F*out)
    b1 = jnp.tile(params["b1"].astype(jnp.float32), (1, fold))
    b2 = jnp.tile(params["b2"].astype(jnp.float32), (1, fold))
    b3 = jnp.tile(params["b3"].astype(jnp.float32), (1, fold))

    # ---- tile-size selection under an explicit VMEM budget ------------------
    c_sz = cdt.itemsize
    o_sz = odt.itemsize
    w_bytes = (f_in * f_hid + f_hid * f_hid + f_hid * f_out) * c_sz
    bias_bytes = 3 * 8 * max(f_hid, 128) * 4            # padded (8,128) f32 tiles
    # Per folded row: double-buffered input + output blocks + ~3 f32 copies of
    # the (tbf, f_hid) matmul intermediates the compiler materializes.
    per_row_bytes = 2 * f_in * c_sz + 2 * f_out * o_sz + 3 * f_hid * 4
    vmem_budget = 24 << 20                               # safe on v7x's 64 MiB/TC
    vmem_rows = max(8, (vmem_budget - 2 * w_bytes - bias_bytes) // per_row_bytes)

    # Keep at least `min_grid_steps` steps for megacore sharding on v7x.
    parallel_cap = max(8, _round_up(_cdiv(bf, max(min_grid_steps, 1)), 8))

    tbf = min(tile_rows, bf, parallel_cap, int(vmem_rows))
    tbf = max(8, (tbf // 8) * 8)                          # multiple of 8 sublanes
    n_steps = _cdiv(bf, tbf)                              # ragged last block OK

    vmem_estimate = 2 * w_bytes + bias_bytes + tbf * per_row_bytes
    vmem_limit = int(min(48 << 20, max(2 * vmem_estimate, 32 << 20)))

    # Advisory cost estimate: ACTUAL dense block-diagonal FLOPs / bytes moved.
    flops = 2 * n_steps * tbf * (f_in * f_hid + f_hid * f_hid + f_hid * f_out)
    bytes_accessed = (
        xf.size * c_sz
        + bf * f_out * o_sz
        + (w1.size + w2.size + w3.size) * c_sz
        + (b1.size + b2.size + b3.size) * 4
    )

    def run(single_buffer_weights):
        if single_buffer_weights:
            # Grid-invariant operands: constant index_map + single buffer.
            resident = lambda shape: pl.BlockSpec(
                shape, lambda i: (0, 0), pipeline_mode=pl.Buffered(1))
        else:
            resident = lambda shape: pl.BlockSpec(shape, lambda i: (0, 0))
        return pl.pallas_call(
            _mlp_kernel,
            out_shape=jax.ShapeDtypeStruct((bf, f_out), odt),
            grid_spec=pltpu.PrefetchScalarGridSpec(
                num_scalar_prefetch=0,
                grid=(n_steps,),
                in_specs=[
                    pl.BlockSpec((tbf, f_in), lambda i: (i, 0)),   # streamed
                    resident((f_in, f_hid)),
                    resident((1, f_hid)),
                    resident((f_hid, f_hid)),
                    resident((1, f_hid)),
                    resident((f_hid, f_out)),
                    resident((1, f_out)),
                ],
                out_specs=pl.BlockSpec((tbf, f_out), lambda i: (i, 0)),
            ),
            compiler_params=pltpu.CompilerParams(
                dimension_semantics=("parallel",),
                vmem_limit_bytes=vmem_limit,
            ),
            cost_estimate=pl.CostEstimate(
                flops=int(flops), transcendentals=0,
                bytes_accessed=int(bytes_accessed)),
        )(xf, w1, b1, w2, b2, w3, b3)

    try:
        out = run(single_buffer_weights=True)
    except Exception:
        # Fallback for JAX versions without pipeline_mode=pl.Buffered(1) on
        # grid-invariant operands; costs ~0.6-2.3 MiB extra VMEM only.
        out = run(single_buffer_weights=False)

    # Unfold lanes back into batch rows and drop the padding.
    return out.reshape(b_pad, out_dim)[:b]


# ----------------------------- params init ----------------------------------


def init_params(key, seq_len, hid_dim, out_dim):
    """PyTorch-Linear-style init; weights stored as (in, out), biases (1, out)."""
    def linear(k, fan_in, fan_out):
        kw, kb = jax.random.split(k)
        bound = 1.0 / jnp.sqrt(jnp.float32(fan_in))
        w_pt = jax.random.uniform(kw, (fan_out, fan_in), jnp.float32, -bound, bound)
        b_pt = jax.random.uniform(kb, (fan_out,), jnp.float32, -bound, bound)
        return w_pt.T, b_pt.reshape(1, fan_out)

    k1, k2, k3 = jax.random.split(key, 3)
    w1, b1 = linear(k1, seq_len, hid_dim)
    w2, b2 = linear(k2, hid_dim, hid_dim)
    w3, b3 = linear(k3, hid_dim, out_dim)
    return {"w1": w1, "b1": b1, "w2": w2, "b2": b2, "w3": w3, "b3": b3}


# ----------------------------- main -----------------------------------------

if __name__ == "__main__":
    # Module hyperparams (forward requires flatten(x) width == seq_len -> inp_dim=1).
    seq_len = 8
    inp_dim = 1
    hid_dim = 12       # module default
    out_dim = 4
    label_seq_len = 4  # unused by forward

    key = jax.random.PRNGKey(0)
    k_params, k_x1, k_x2 = jax.random.split(key, 3)
    params = init_params(k_params, seq_len, hid_dim, out_dim)

    # --- Test 1: toy size, force Pallas; f32 operands for tight check -------
    batch = 4
    x_small = jax.random.normal(k_x1, (batch, seq_len, inp_dim), jnp.float32)
    ref_small = _xla_reference(x_small.reshape(batch, -1), params)

    y_f32 = traff_net_reg_forward(
        x_small, params, compute_dtype=jnp.float32, use_pallas=True)
    jax.block_until_ready(y_f32)
    assert y_f32.shape == (batch, out_dim)
    assert jnp.allclose(y_f32, ref_small, atol=1e-4, rtol=1e-4)

    # Default bf16-operand path (f32 accumulation).
    y_bf16 = traff_net_reg_forward(x_small, params, use_pallas=True)
    jax.block_until_ready(y_bf16)
    assert jnp.allclose(y_bf16, ref_small, atol=0.1, rtol=0.05)

    # Auto dispatch at tiny batch takes the fused-XLA fallback; same numbers.
    y_auto = traff_net_reg_forward(x_small, params)
    assert jnp.allclose(y_auto, ref_small, atol=1e-5, rtol=1e-5)

    # --- Test 2: larger batch, multi-step grid (non-multiple of fold) -------
    batch_big = 1000   # pads to 1024 rows -> 32 folded rows
    x_big = jax.random.normal(k_x2, (batch_big, seq_len, inp_dim), jnp.float32)
    ref_big = _xla_reference(x_big.reshape(batch_big, -1), params)

    y_big = traff_net_reg_forward(
        x_big, params, tile_rows=8, compute_dtype=jnp.float32, use_pallas=True)
    jax.block_until_ready(y_big)
    assert y_big.shape == (batch_big, out_dim)
    assert jnp.allclose(y_big, ref_big, atol=1e-4, rtol=1e-4)

    # Ragged last block: grid = cdiv(32, 24) = 2, second block partially OOB.
    y_rag = traff_net_reg_forward(
        x_big, params, tile_rows=24, min_grid_steps=1,
        compute_dtype=jnp.float32, use_pallas=True)
    jax.block_until_ready(y_rag)
    assert jnp.allclose(y_rag, ref_big, atol=1e-4, rtol=1e-4)

    # --- Test 3: default bf16 operands + bf16 output (HBM-bound mode) -------
    y_b16o = traff_net_reg_forward(
        x_big, params, out_dtype=jnp.bfloat16, use_pallas=True)
    jax.block_until_ready(y_b16o)
    assert y_b16o.shape == (batch_big, out_dim)
    assert y_b16o.dtype == jnp.bfloat16
    assert jnp.allclose(y_b16o.astype(jnp.float32), ref_big, atol=0.15, rtol=0.1)

    print("KERNEL_OK")
</pallas_src>

<mosaic_0001>
module attributes {stable_mosaic.version = 11 : i64} {
  func.func @_mlp_kernel(%arg0: i32, %arg1: memref<8x256xf32, #tpu.memory_space<vmem>>, %arg2: memref<256x384xf32, #tpu.memory_space<vmem>>, %arg3: memref<1x384xf32, #tpu.memory_space<vmem>>, %arg4: memref<384x384xf32, #tpu.memory_space<vmem>>, %arg5: memref<1x384xf32, #tpu.memory_space<vmem>>, %arg6: memref<384x128xf32, #tpu.memory_space<vmem>>, %arg7: memref<1x128xf32, #tpu.memory_space<vmem>>, %arg8: memref<8x128xf32, #tpu.memory_space<vmem>>) attributes {dimension_semantics = [#tpu.dimension_semantics<parallel>], iteration_bounds = array<i64: 1>, scalar_prefetch = 0 : i64, scratch_operands = 0 : i64, tpu.core_type = #tpu.core_type<tc>, window_params = [{transform_indices = @transform_0, window_bounds = array<i64: 8, 256>}, {pipeline_mode = #tpu.pipeline_mode<synchronous>, transform_indices = @transform_1, window_bounds = array<i64: 256, 384>}, {pipeline_mode = #tpu.pipeline_mode<synchronous>, transform_indices = @transform_2, window_bounds = array<i64: 1, 384>}, {pipeline_mode = #tpu.pipeline_mode<synchronous>, transform_indices = @transform_3, window_bounds = array<i64: 384, 384>}, {pipeline_mode = #tpu.pipeline_mode<synchronous>, transform_indices = @transform_4, window_bounds = array<i64: 1, 384>}, {pipeline_mode = #tpu.pipeline_mode<synchronous>, transform_indices = @transform_5, window_bounds = array<i64: 384, 128>}, {pipeline_mode = #tpu.pipeline_mode<synchronous>, transform_indices = @transform_6, window_bounds = array<i64: 1, 128>}, {transform_indices = @transform_7, window_bounds = array<i64: 8, 128>}]} {
    %c0 = arith.constant 0 : index
    %c0_0 = arith.constant 0 : index
    %0 = vector.load %arg1[%c0, %c0_0] : memref<8x256xf32, #tpu.memory_space<vmem>>, vector<8x256xf32>
    %c0_1 = arith.constant 0 : index
    %c0_2 = arith.constant 0 : index
    %1 = vector.load %arg2[%c0_1, %c0_2] : memref<256x384xf32, #tpu.memory_space<vmem>>, vector<256x384xf32>
    %cst = arith.constant dense<0.000000e+00> : vector<8x384xf32>
    %2 = tpu.matmul %0, %1, %cst {dimension_numbers = #tpu.dot_dimension_numbers<[1], [0], [0], [1], [0, 0, 1, 1], [], []>} : vector<8x256xf32>, vector<256x384xf32>, vector<8x384xf32> -> vector<8x384xf32>
    %c0_3 = arith.constant 0 : index
    %c0_4 = arith.constant 0 : index
    %3 = vector.load %arg3[%c0_3, %c0_4] : memref<1x384xf32, #tpu.memory_space<vmem>>, vector<1x384xf32>
    %4 = vector.broadcast %3 : vector<1x384xf32> to vector<8x384xf32>
    %5 = arith.addf %2, %4 : vector<8x384xf32>
    %cst_5 = arith.constant 0.000000e+00 : f32
    %6 = vector.broadcast %cst_5 : f32 to vector<8x384xf32>
    %7 = arith.maximumf %5, %6 : vector<8x384xf32>
    %c0_6 = arith.constant 0 : index
    %c0_7 = arith.constant 0 : index
    %8 = vector.load %arg4[%c0_6, %c0_7] : memref<384x384xf32, #tpu.memory_space<vmem>>, vector<384x384xf32>
    %cst_8 = arith.constant dense<0.000000e+00> : vector<8x384xf32>
    %9 = tpu.matmul %7, %8, %cst_8 {dimension_numbers = #tpu.dot_dimension_numbers<[1], [0], [0], [1], [0, 0, 1, 1], [], []>} : vector<8x384xf32>, vector<384x384xf32>, vector<8x384xf32> -> vector<8x384xf32>
    %c0_9 = arith.constant 0 : index
    %c0_10 = arith.constant 0 : index
    %10 = vector.load %arg5[%c0_9, %c0_10] : memref<1x384xf32, #tpu.memory_space<vmem>>, vector<1x384xf32>
    %11 = vector.broadcast %10 : vector<1x384xf32> to vector<8x384xf32>
    %12 = arith.addf %9, %11 : vector<8x384xf32>
    %cst_11 = arith.constant 0.000000e+00 : f32
    %13 = vector.broadcast %cst_11 : f32 to vector<8x384xf32>
    %14 = arith.maximumf %12, %13 : vector<8x384xf32>
    %c0_12 = arith.constant 0 : index
    %c0_13 = arith.constant 0 : index
    %15 = vector.load %arg6[%c0_12, %c0_13] : memref<384x128xf32, #tpu.memory_space<vmem>>, vector<384x128xf32>
    %cst_14 = arith.constant dense<0.000000e+00> : vector<8x128xf32>
    %16 = tpu.matmul %14, %15, %cst_14 {dimension_numbers = #tpu.dot_dimension_numbers<[1], [0], [0], [1], [0, 0, 1, 1], [], []>} : vector<8x384xf32>, vector<384x128xf32>, vector<8x128xf32> -> vector<8x128xf32>
    %c0_15 = arith.constant 0 : index
    %c0_16 = arith.constant 0 : index
    %17 = vector.load %arg7[%c0_15, %c0_16] : memref<1x128xf32, #tpu.memory_space<vmem>>, vector<1x128xf32>
    %18 = vector.broadcast %17 : vector<1x128xf32> to vector<8x128xf32>
    %19 = arith.addf %16, %18 : vector<8x128xf32>
    %c0_17 = arith.constant 0 : index
    %c0_18 = arith.constant 0 : index
    %20 = vector.load %arg8[%c0_17, %c0_18] : memref<8x128xf32, #tpu.memory_space<vmem>>, vector<8x128xf32>
    tpu.vector_store %arg8[%c0_17, %c0_18], %19 {strides = array<i32>} : memref<8x128xf32, #tpu.memory_space<vmem>>, vector<8x128xf32>,
    return
  }
  func.func @transform_0(%arg0: i32) -> (i32, i32) {
    %c0_i32 = arith.constant 0 : i32
    %c0_i32_0 = arith.constant 0 : i32
    return %arg0, %c0_i32 : i32, i32
  }
  func.func @transform_1(%arg0: i32) -> (i32, i32) {
    %c0_i32 = arith.constant 0 : i32
    %c0_i32_0 = arith.constant 0 : i32
    %c0_i32_1 = arith.constant 0 : i32
    return %c0_i32, %c0_i32_0 : i32, i32
  }
  func.func @transform_2(%arg0: i32) -> (i32, i32) {
    %c0_i32 = arith.constant 0 : i32
    %c0_i32_0 = arith.constant 0 : i32
    %c0_i32_1 = arith.constant 0 : i32
    return %c0_i32, %c0_i32_0 : i32, i32
  }
  func.func @transform_3(%arg0: i32) -> (i32, i32) {
    %c0_i32 = arith.constant 0 : i32
    %c0_i32_0 = arith.constant 0 : i32
    %c0_i32_1 = arith.constant 0 : i32
    return %c0_i32, %c0_i32_0 : i32, i32
  }
  func.func @transform_4(%arg0: i32) -> (i32, i32) {
    %c0_i32 = arith.constant 0 : i32
    %c0_i32_0 = arith.constant 0 : i32
    %c0_i32_1 = arith.constant 0 : i32
    return %c0_i32, %c0_i32_0 : i32, i32
  }
  func.func @transform_5(%arg0: i32) -> (i32, i32) {
    %c0_i32 = arith.constant 0 : i32
    %c0_i32_0 = arith.constant 0 : i32
    %c0_i32_1 = arith.constant 0 : i32
    return %c0_i32, %c0_i32_0 : i32, i32
  }
  func.func @transform_6(%arg0: i32) -> (i32, i32) {
    %c0_i32 = arith.constant 0 : i32
    %c0_i32_0 = arith.constant 0 : i32
    %c0_i32_1 = arith.constant 0 : i32
    return %c0_i32, %c0_i32_0 : i32, i32
  }
  func.func @transform_7(%arg0: i32) -> (i32, i32) {
    %c0_i32 = arith.constant 0 : i32
    %c0_i32_0 = arith.constant 0 : i32
    return %arg0, %c0_i32 : i32, i32
  }
}

module attributes {stable_mosaic.version = 11 : i64} {
  func.func @_mlp_kernel(%arg0: i32, %arg1: memref<8x256xf32, #tpu.memory_space<vmem>>, %arg2: memref<256x384xf32, #tpu.memory_space<vmem>>, %arg3: memref<1x384xf32, #tpu.memory_space<vmem>>, %arg4: memref<384x384xf32, #tpu.memory_space<vmem>>, %arg5: memref<1x384xf32, #tpu.memory_space<vmem>>, %arg6: memref<384x128xf32, #tpu.memory_space<vmem>>, %arg7: memref<1x128xf32, #tpu.memory_space<vmem>>, %arg8: memref<8x128xf32, #tpu.memory_space<vmem>>) attributes {dimension_semantics = [#tpu.dimension_semantics<parallel>], iteration_bounds = array<i64: 1>, scalar_prefetch = 0 : i64, scratch_operands = 0 : i64, tpu.core_type = #tpu.core_type<tc>, window_params = [{transform_indices = @transform_0, window_bounds = array<i64: 8, 256>}, {pipeline_mode = #tpu.pipeline_mode<synchronous>, transform_indices = @transform_1, window_bounds = array<i64: 256, 384>}, {pipeline_mode = #tpu.pipeline_mode<synchronous>, transform_indices = @transform_2, window_bounds = array<i64: 1, 384>}, {pipeline_mode = #tpu.pipeline_mode<synchronous>, transform_indices = @transform_3, window_bounds = array<i64: 384, 384>}, {pipeline_mode = #tpu.pipeline_mode<synchronous>, transform_indices = @transform_4, window_bounds = array<i64: 1, 384>}, {pipeline_mode = #tpu.pipeline_mode<synchronous>, transform_indices = @transform_5, window_bounds = array<i64: 384, 128>}, {pipeline_mode = #tpu.pipeline_mode<synchronous>, transform_indices = @transform_6, window_bounds = array<i64: 1, 128>}, {transform_indices = @transform_7, window_bounds = array<i64: 8, 128>}]} {
    %c0 = arith.constant 0 : index
    %c0_0 = arith.constant 0 : index
    %0 = vector.load %arg1[%c0, %c0_0] : memref<8x256xf32, #tpu.memory_space<vmem>>, vector<8x256xf32>
    %c0_1 = arith.constant 0 : index
    %c0_2 = arith.constant 0 : index
    %1 = vector.load %arg2[%c0_1, %c0_2] : memref<256x384xf32, #tpu.memory_space<vmem>>, vector<256x384xf32>
    %cst = arith.constant dense<0.000000e+00> : vector<8x384xf32>
    %2 = tpu.matmul %0, %1, %cst {dimension_numbers = #tpu.dot_dimension_numbers<[1], [0], [0], [1], [0, 0, 1, 1], [], []>} : vector<8x256xf32>, vector<256x384xf32>, vector<8x384xf32> -> vector<8x384xf32>
    %c0_3 = arith.constant 0 : index
    %c0_4 = arith.constant 0 : index
    %3 = vector.load %arg3[%c0_3, %c0_4] : memref<1x384xf32, #tpu.memory_space<vmem>>, vector<1x384xf32>
    %4 = vector.broadcast %3 : vector<1x384xf32> to vector<8x384xf32>
    %5 = arith.addf %2, %4 : vector<8x384xf32>
    %cst_5 = arith.constant 0.000000e+00 : f32
    %6 = vector.broadcast %cst_5 : f32 to vector<8x384xf32>
    %7 = arith.maximumf %5, %6 : vector<8x384xf32>
    %c0_6 = arith.constant 0 : index
    %c0_7 = arith.constant 0 : index
    %8 = vector.load %arg4[%c0_6, %c0_7] : memref<384x384xf32, #tpu.memory_space<vmem>>, vector<384x384xf32>
    %cst_8 = arith.constant dense<0.000000e+00> : vector<8x384xf32>
    %9 = tpu.matmul %7, %8, %cst_8 {dimension_numbers = #tpu.dot_dimension_numbers<[1], [0], [0], [1], [0, 0, 1, 1], [], []>} : vector<8x384xf32>, vector<384x384xf32>, vector<8x384xf32> -> vector<8x384xf32>
    %c0_9 = arith.constant 0 : index
    %c0_10 = arith.constant 0 : index
    %10 = vector.load %arg5[%c0_9, %c0_10] : memref<1x384xf32, #tpu.memory_space<vmem>>, vector<1x384xf32>
    %11 = vector.broadcast %10 : vector<1x384xf32> to vector<8x384xf32>
    %12 = arith.addf %9, %11 : vector<8x384xf32>
    %cst_11 = arith.constant 0.000000e+00 : f32
    %13 = vector.broadcast %cst_11 : f32 to vector<8x384xf32>
    %14 = arith.maximumf %12, %13 : vector<8x384xf32>
    %c0_12 = arith.constant 0 : index
    %c0_13 = arith.constant 0 : index
    %15 = vector.load %arg6[%c0_12, %c0_13] : memref<384x128xf32, #tpu.memory_space<vmem>>, vector<384x128xf32>
    %cst_14 = arith.constant dense<0.000000e+00> : vector<8x128xf32>
    %16 = tpu.matmul %14, %15, %cst_14 {dimension_numbers = #tpu.dot_dimension_numbers<[1], [0], [0], [1], [0, 0, 1, 1], [], []>} : vector<8x384xf32>, vector<384x128xf32>, vector<8x128xf32> -> vector<8x128xf32>
    %c0_15 = arith.constant 0 : index
    %c0_16 = arith.constant 0 : index
    %17 = vector.load %arg7[%c0_15, %c0_16] : memref<1x128xf32, #tpu.memory_space<vmem>>, vector<1x128xf32>
    %18 = vector.broadcast %17 : vector<1x128xf32> to vector<8x128xf32>
    %19 = arith.addf %16, %18 : vector<8x128xf32>
    %c0_17 = arith.constant 0 : index
    %c0_18 = arith.constant 0 : index
    %20 = vector.load %arg8[%c0_17, %c0_18] : memref<8x128xf32, #tpu.memory_space<vmem>>, vector<8x128xf32>
    tpu.vector_store %arg8[%c0_17, %c0_18], %19 {strides = array<i32>} : memref<8x128xf32, #tpu.memory_space<vmem>>, vector<8x128xf32>,
    return
  }
  func.func @transform_0(%arg0: i32) -> (i32, i32) {
    %c0_i32 = arith.constant 0 : i32
    %c0_i32_0 = arith.constant 0 : i32
    return %arg0, %c0_i32 : i32, i32
  }
  func.func @transform_1(%arg0: i32) -> (i32, i32) {
    %c0_i32 = arith.constant 0 : i32
    %c0_i32_0 = arith.constant 0 : i32
    %c0_i32_1 = arith.constant 0 : i32
    return %c0_i32, %c0_i32_0 : i32, i32
  }
  func.func @transform_2(%arg0: i32) -> (i32, i32) {
    %c0_i32 = arith.constant 0 : i32
    %c0_i32_0 = arith.constant 0 : i32
    %c0_i32_1 = arith.constant 0 : i32
    return %c0_i32, %c0_i32_0 : i32, i32
  }
  func.func @transform_3(%arg0: i32) -> (i32, i32) {
    %c0_i32 = arith.constant 0 : i32
    %c0_i32_0 = arith.constant 0 : i32
    %c0_i32_1 = arith.constant 0 : i32
    return %c0_i32, %c0_i32_0 : i32, i32
  }
  func.func @transform_4(%arg0: i32) -> (i32, i32) {
    %c0_i32 = arith.constant 0 : i32
    %c0_i32_0 = arith.constant 0 : i32
    %c0_i32_1 = arith.constant 0 : i32
    return %c0_i32, %c0_i32_0 : i32, i32
  }
  func.func @transform_5(%arg0: i32) -> (i32, i32) {
    %c0_i32 = arith.constant 0 : i32
    %c0_i32_0 = arith.constant 0 : i32
    %c0_i32_1 = arith.constant 0 : i32
    return %c0_i32, %c0_i32_0 : i32, i32
  }
  func.func @transform_6(%arg0: i32) -> (i32, i32) {
    %c0_i32 = arith.constant 0 : i32
    %c0_i32_0 = arith.constant 0 : i32
    %c0_i32_1 = arith.constant 0 : i32
    return %c0_i32, %c0_i32_0 : i32, i32
  }
  func.func @transform_7(%arg0: i32) -> (i32, i32) {
    %c0_i32 = arith.constant 0 : i32
    %c0_i32_0 = arith.constant 0 : i32
    return %arg0, %c0_i32 : i32, i32
  }
}

</mosaic_0001>

<bundles_post_ra>
// kernel: tpu_custom_call.1
= control target key start
LH: loop header
LB: loop body
LE: loop exit
PB: predicated region body
PF: predicated region fallthrough
CT: control target
= control target key end

     0   :  { %12 = vsyncpa [#allocation3], 0  ;;  %s1819_s0 = inlined_call_operand.hbm [shape: f32[8,256], index: 0, kind: input, shape index: {}]   ;;  %s1820_s1 = inlined_call_operand.hbm [shape: f32[256,384], index: 1, kind: input, shape index: {}]   ;;  %s1821_s2 = inlined_call_operand.vmem [shape: f32[1,384], index: 2, kind: input, shape index: {}]   ;;  %s1822_s3 = inlined_call_operand.hbm [shape: f32[384,384], index: 3, kind: input, shape index: {}]   ;;  %s1823_s4 = inlined_call_operand.vmem [shape: f32[1,384], index: 4, kind: input, shape index: {}]   ;;  %s1824_s5 = inlined_call_operand.hbm [shape: f32[384,128], index: 5, kind: input, shape index: {}]   ;;  %s1825_s6 = inlined_call_operand.vmem [shape: f32[1,128], index: 6, kind: input, shape index: {}]   ;;  %s1826_s7 = inlined_call_operand.hbm [shape: f32[8,128], index: 7, kind: output, shape index: {}]  }
   0x1   :  { %13 = vsyncpa [#allocation6], 0 }
   0x2   :  { %14 = vsyncpa [#allocation9], 0 }
   0x3   :  { %15 = vsyncpa [#allocation4], 0  ;;  %s1646_s24 = smov [#allocation5]   ;;  %s1528_s28 = scalar_lea.hbm %s1820_s1, 12288 }
   0x4   :  { %s31_s25 = sshll.u32 %s1646_s24, 4  ;;  %p1529_p0 = scmp.ne.s32.totalorder %s1820_s1, %s1528_s28  ;;  %s32_s25 = int_to_ptr.vmem [resolvable:$true] %s31_s25 }
   0x5   :  { %p1532_p1 = scmp.lt.u32.totalorder %s1528_s28, %s1820_s1 }
   0x7   :  { %p1534_p2 = pnand %p1532_p1, %p1529_p0 }
   0x9   :  { %1537 = shalt.err (!%p1534_p2)
}
   0xa   :  { %s1538_s10 = scalar_lea.vmem %s32_s25, 12288  ;;  %p1543_p4 = scmp.lt.s32.totalorder %s32_s25, %s32_s25 }
   0xb   :  { %p1539_p3 = scmp.ne.s32.totalorder %s32_s25, %s1538_s10  ;;  %p1544_p5 = scmp.lt.s32.totalorder %s1538_s10, %s1538_s10 }
   0xd   :  { %p1545_p6 = por %p1544_p5, %p1543_p4 }
   0xf   :  { %p1546_p7 = pnand %p1545_p6, %p1539_p3 }
  0x11   :  { %1549 = shalt.err (!%p1546_p7)
}
  0x12   :  { %s1647_s11 = smov 384   ;;  %s1648_s12 = smov 24  }
  0x13   :  { %37 = dma.hbm_to_vmem [thread:$0]  %s1820_s1, 12288, %s32_s25, [#allocation6], %s1647_s11, %s1647_s11, %s1648_s12  }
  0x14   :  { %s1649_s15 = smov [#allocation2]   ;;  %s1650_s17 = smov [#allocation7]  }
  0x15   :  { %s22_s16 = sshll.u32 %s1649_s15, 4  ;;  %s45_s18 = sshll.u32 %s1650_s17, 4  ;;  %s23_s16 = int_to_ptr.vmem [resolvable:$true] %s22_s16  ;;  %s46_s18 = int_to_ptr.vmem [resolvable:$true] %s45_s18 }
  0x16   :  { %s1550_s21 = scalar_lea.hbm %s1819_s0, 256 }
  0x17   :  { %p1551_p8 = scmp.ne.s32.totalorder %s1819_s0, %s1550_s21  ;;  %p1554_p9 = scmp.lt.u32.totalorder %s1550_s21, %s1819_s0 }
  0x19   :  { %p1556_p10 = pnand %p1554_p9, %p1551_p8 }
  0x1b   :  { %1559 = shalt.err (!%p1556_p10)
}
  0x1c   :  { %s1560_s1 = scalar_lea.vmem %s23_s16, 256  ;;  %p1565_p12 = scmp.lt.s32.totalorder %s23_s16, %s23_s16 }
  0x1d   :  { %p1561_p11 = scmp.ne.s32.totalorder %s23_s16, %s1560_s1  ;;  %p1566_p13 = scmp.lt.s32.totalorder %s1560_s1, %s1560_s1 }
  0x1f   :  { %p1567_p0 = por %p1566_p13, %p1565_p12 }
  0x21   :  { %p1568_p1 = pnand %p1567_p0, %p1561_p11 }
  0x23   :  { %1571 = shalt.err (!%p1568_p1)
}
  0x24   :  { %25 = dma.hbm_to_vmem [thread:$0]  %s1819_s0, 256, %s23_s16, [#allocation3]  }
  0x25   :  { %s1572_s30 = scalar_lea.hbm %s1822_s3, 18432 }
  0x26   :  { %p1573_p2 = scmp.ne.s32.totalorder %s1822_s3, %s1572_s30  ;;  %p1576_p3 = scmp.lt.u32.totalorder %s1572_s30, %s1822_s3 }
  0x28   :  { %p1578_p4 = pnand %p1576_p3, %p1573_p2 }
  0x2a   :  { %1581 = shalt.err (!%p1578_p4)
}
  0x2b   :  { %s1582_s14 = scalar_lea.vmem %s46_s18, 18432  ;;  %p1587_p6 = scmp.lt.s32.totalorder %s46_s18, %s46_s18 }
  0x2c   :  { %p1583_p5 = scmp.ne.s32.totalorder %s46_s18, %s1582_s14  ;;  %p1588_p7 = scmp.lt.s32.totalorder %s1582_s14, %s1582_s14 }
  0x2e   :  { %p1589_p8 = por %p1588_p7, %p1587_p6 }
  0x30   :  { %p1590_p9 = pnand %p1589_p8, %p1583_p5 }
  0x32   :  { %1593 = shalt.err (!%p1590_p9)
}
  0x33   :  { %51 = dma.hbm_to_vmem [thread:$0]  %s1822_s3, 18432, %s46_s18, [#allocation6], %s1647_s11, %s1647_s11, %s1648_s12  }
  0x34   :  { %s1651_s16 = smov [#allocation8]   ;;  %s1594_s21 = scalar_lea.hbm %s1824_s5, 6144 }
  0x35   :  { %s59_s17 = sshll.u32 %s1651_s16, 4  ;;  %p1595_p10 = scmp.ne.s32.totalorder %s1824_s5, %s1594_s21  ;;  %s60_s17 = int_to_ptr.vmem [resolvable:$true] %s59_s17 }
  0x36   :  { %p1598_p11 = scmp.lt.u32.totalorder %s1594_s21, %s1824_s5 }
  0x38   :  { %p1600_p12 = pnand %p1598_p11, %p1595_p10 }
  0x3a   :  { %1603 = shalt.err (!%p1600_p12)
}
  0x3b   :  { %s1604_s1 = scalar_lea.vmem %s60_s17, 6144  ;;  %p1609_p0 = scmp.lt.s32.totalorder %s60_s17, %s60_s17 }
  0x3c   :  { %p1605_p13 = scmp.ne.s32.totalorder %s60_s17, %s1604_s1  ;;  %p1610_p1 = scmp.lt.s32.totalorder %s1604_s1, %s1604_s1 }
  0x3e   :  { %p1611_p2 = por %p1610_p1, %p1609_p0 }
  0x40   :  { %p1612_p3 = pnand %p1611_p2, %p1605_p13 }
  0x42   :  { %1615 = shalt.err (!%p1612_p3)
}
  0x43   :  { %s1652_s3 = smov 128   ;;  %s1653_s11 = smov 8  }
  0x44   :  { %65 = dma.hbm_to_vmem [thread:$0]  %s1824_s5, 6144, %s60_s17, [#allocation9], %s1652_s3, %s1652_s3, %s1653_s11  }
  0x45   :  { %1638 = dma.done.wait [#allocation3], 256  }
  0x46   :  { %1639 = vsyncadd [#allocation3], 4294967040 }
  0x47   :  { %1640 = dma.done.wait [#allocation6], 30720  }
  0x48   :  { %1641 = vsyncadd [#allocation6], 4294936576 }
  0x49   :  { %1642 = dma.done.wait [#allocation9], 6144  }
  0x4a   :  { %1643 = vsyncadd [#allocation9], 4294961152  ;;  %v83_v0 = vld [vmem:[#allocation5 + $0x8] sm:$0xff]  ;;  %v86_v1 = vld [vmem:[#allocation5 + $0x20] sm:$0xff]  ;;  %vm1656_vm0 = vmmov 0   ;;  %s1657_s29 = smov [#allocation10]  }
  0x4b   :  { %v82_v2 = vld [vmem:[#allocation5] sm:$0xff]  ;;  %v1208_v3 = vpack.c.bf16 %v86_v1, %v83_v0  ;;  %v85_v4 = vld [vmem:[#allocation5 + $0x18] sm:$0xff]  ;;  %v92_v6 = vld [vmem:[#allocation5 + $0x50] sm:$0xff]  ;;  %s987_s30 = sshll.u32 %s1657_s29, 4  ;;  %s988_s30 = int_to_ptr.vmem [resolvable:$true] %s987_s30 }
  0x4c   :  { %v89_v5 = vld [vmem:[#allocation5 + $0x38] sm:$0xff]  ;;  %v1210_v7 = vpack.c.bf16 %v85_v4, %v82_v2  ;;  %v88_v9 = vld [vmem:[#allocation5 + $0x30] sm:$0xff]  ;;  %v91_v10 = vld [vmem:[#allocation5 + $0x48] sm:$0xff]  ;;  %s1616_s8 = scalar_lea.vmem %s988_s30, 128  ;;  %p1621_p5 = scmp.lt.s32.totalorder %s988_s30, %s988_s30 }
  0x4d   :  { %v1212_v8 = vpack.c.bf16 %v92_v6, %v89_v5  ;;  %v95_v11 = vld [vmem:[#allocation5 + $0x68] sm:$0xff]  ;;  %1209 = vmatprep.subr.bf16.mxu0 %v1208_v3  ;;  %v98_v12 = vld [vmem:[#allocation5 + $0x80] sm:$0xff]  ;;  %v1214_v13 = vpack.c.bf16 %v91_v10, %v88_v9  ;;  %v97_v16 = vld [vmem:[#allocation5 + $0x78] sm:$0xff]  ;;  %p1617_p4 = scmp.ne.s32.totalorder %s988_s30, %s1616_s8  ;;  %p1622_p6 = scmp.lt.s32.totalorder %s1616_s8, %s1616_s8 }
  0x4e   :  { %1211 = vmatpush1.bf16.msra.mxu0 %v1210_v7  ;;  %v1216_v14 = vpack.c.bf16 %v98_v12, %v95_v11  ;;  %v94_v15 = vld [vmem:[#allocation5 + $0x60] sm:$0xff]  ;;  %v101_v17 = vld [vmem:[#allocation5 + $0x98] sm:$0xff]  ;;  %v104_v18 = vld [vmem:[#allocation5 + $0xb0] sm:$0xff] }
  0x4f   :  { %1213 = vmatprep.subr.bf16.mxu0 %v1212_v8  ;;  %v1218_v19 = vpack.c.bf16 %v97_v16, %v94_v15  ;;  %v1220_v20 = vpack.c.bf16 %v104_v18, %v101_v17  ;;  %v100_v21 = vld [vmem:[#allocation5 + $0x90] sm:$0xff]  ;;  %v103_v22 = vld [vmem:[#allocation5 + $0xa8] sm:$0xff]  ;;  %v110_v24 = vld [vmem:[#allocation5 + $0xe0] sm:$0xff]  ;;  %p1623_p7 = por %p1622_p6, %p1621_p5 }
  0x50   :  { %v107_v23 = vld [vmem:[#allocation5 + $0xc8] sm:$0xff]  ;;  %v1222_v25 = vpack.c.bf16 %v103_v22, %v100_v21  ;;  %v106_v27 = vld [vmem:[#allocation5 + $0xc0] sm:$0xff]  ;;  %v109_v28 = vld [vmem:[#allocation5 + $0xd8] sm:$0xff] }
  0x51   :  { %v1224_v26 = vpack.c.bf16 %v110_v24, %v107_v23  ;;  %v113_v29 = vld [vmem:[#allocation5 + $0xf8] sm:$0xff]  ;;  %v116_v30 = vld [vmem:[#allocation5 + $0x110] sm:$0xff]  ;;  %v1226_v31 = vpack.c.bf16 %v109_v28, %v106_v27  ;;  %v115_v34 = vld [vmem:[#allocation5 + $0x108] sm:$0xff]  ;;  %p1624_p8 = pnand %p1623_p7, %p1617_p4 }
  0x52   :  { %1215 = vmatpush1.bf16.msra.mxu0 %v1214_v13  ;;  %v1228_v32 = vpack.c.bf16 %v116_v30, %v113_v29  ;;  %v112_v33 = vld [vmem:[#allocation5 + $0xf0] sm:$0xff]  ;;  %v119_v35 = vld [vmem:[#allocation5 + $0x128] sm:$0xff]  ;;  %v122_v36 = vld [vmem:[#allocation5 + $0x140] sm:$0xff] }
  0x53   :  { %1217 = vmatprep.subr.bf16.mxu0 %v1216_v14  ;;  %v1230_v37 = vpack.c.bf16 %v115_v34, %v112_v33  ;;  %v118_v38 = vld [vmem:[#allocation5 + $0x120] sm:$0xff]  ;;  %v121_v39 = vld [vmem:[#allocation5 + $0x138] sm:$0xff]  ;;  %v1232_v41 = vpack.c.bf16 %v122_v36, %v119_v35  ;;  %v128_v42 = vld [vmem:[#allocation5 + $0x170] sm:$0xff] }
  0x54   :  { %v125_v40 = vld [vmem:[#allocation5 + $0x158] sm:$0xff]  ;;  %v132_v43 = vld [vmem:[#allocation5 + $0x190] sm:$0xff]  ;;  %v135_v44 = vld [vmem:[#allocation5 + $0x1a8] sm:$0xff]  ;;  %v1234_v53 = vpack.c.bf16 %v121_v39, %v118_v38 }
  0x55   :  { %v1272_v45 = vpack.c.bf16 %v135_v44, %v132_v43  ;;  %v84_v46 = vld [vmem:[#allocation5 + $0x10] sm:$0xff]  ;;  %v87_v47 = vld [vmem:[#allocation5 + $0x28] sm:$0xff]  ;;  %v81_v48 = vld [vmem:[#allocation2 + $0x8] sm:$0xff]  ;;  %v1236_v58 = vpack.c.bf16 %v128_v42, %v125_v40 }
  0x56   :  { %1219 = vmatpush1.bf16.msra.mxu0 %v1218_v19  ;;  %v124_v49 = vld [vmem:[#allocation5 + $0x150] sm:$0xff]  ;;  %v1274_v50 = vpack.c.bf16 %v87_v47, %v84_v46  ;;  %259 = vmatprep.mubr.f32.mxu0 %v81_v48  ;;  %v138_v51 = vld [vmem:[#allocation5 + $0x1c0] sm:$0xff]  ;;  %v141_v52 = vld [vmem:[#allocation5 + $0x1d8] sm:$0xff] }
  0x57   :  { %1221 = vmatprep.subr.bf16.mxu0 %v1220_v20  ;;  %330 = vmatprep.mubr.f32.mxu1 %v81_v48  ;;  %v1276_v54 = vpack.c.bf16 %v141_v52, %v138_v51  ;;  %v90_v55 = vld [vmem:[#allocation5 + $0x40] sm:$0xff]  ;;  %v93_v56 = vld [vmem:[#allocation5 + $0x58] sm:$0xff]  ;;  %v144_v57 = vld [vmem:[#allocation5 + $0x1f0] sm:$0xff] }
  0x58   :  { %1273 = vmatprep.subr.bf16.mxu1 %v1272_v45  ;;  %v127_v59 = vld [vmem:[#allocation5 + $0x168] sm:$0xff]  ;;  %v1278_v61 = vpack.c.bf16 %v93_v56, %v90_v55  ;;  %v134_v63 = vld [vmem:[#allocation5 + $0x1a0] sm:$0xff]  ;;  %v96_v1 = vld [vmem:[#allocation5 + $0x70] sm:$0xff] }
  0x59   :  { %v131_v60 = vld [vmem:[#allocation5 + $0x188] sm:$0xff]  ;;  %1275 = vmatpush3.bf16.msra.mxu1 %v1274_v50  ;;  %v150_v3 = vld [vmem:[#allocation5 + $0x220] sm:$0xff]  ;;  %v153_v4 = vld [vmem:[#allocation5 + $0x238] sm:$0xff]  ;;  %v1238_v5 = vpack.c.bf16 %v127_v59, %v124_v49 }
  0x5a   :  { %1223 = vmatpush1.bf16.msra.mxu0 %v1222_v25  ;;  %v147_v62 = vld [vmem:[#allocation5 + $0x208] sm:$0xff]  ;;  %1277 = vmatprep.subr.bf16.mxu1 %v1276_v54  ;;  %v1240_v6 = vpack.c.bf16 %v134_v63, %v131_v60  ;;  %v130_v7 = vld [vmem:[#allocation5 + $0x180] sm:$0xff]  ;;  %v133_v8 = vld [vmem:[#allocation5 + $0x198] sm:$0xff]  ;;  %v1284_v12 = vpack.c.bf16 %v153_v4, %v150_v3 }
  0x5b   :  { %1225 = vmatprep.subr.bf16.mxu0 %v1224_v26  ;;  %v1280_v0 = vpack.c.bf16 %v147_v62, %v144_v57  ;;  %v99_v2 = vld [vmem:[#allocation5 + $0x88] sm:$0xff]  ;;  %v137_v9 = vld [vmem:[#allocation5 + $0x1b8] sm:$0xff]  ;;  %v140_v11 = vld [vmem:[#allocation5 + $0x1d0] sm:$0xff]  ;;  %v1242_v17 = vpack.c.bf16 %v133_v8, %v130_v7 }
  0x5c   :  { %v1282_v10 = vpack.c.bf16 %v99_v2, %v96_v1  ;;  %v102_v13 = vld [vmem:[#allocation5 + $0xa0] sm:$0xff]  ;;  %v105_v14 = vld [vmem:[#allocation5 + $0xb8] sm:$0xff]  ;;  %v156_v15 = vld [vmem:[#allocation5 + $0x250] sm:$0xff]  ;;  %v1244_v18 = vpack.c.bf16 %v140_v11, %v137_v9 }
  0x5d   :  { %1279 = vmatpush3.bf16.msra.mxu1 %v1278_v61  ;;  %v159_v16 = vld [vmem:[#allocation5 + $0x268] sm:$0xff]  ;;  %v136_v19 = vld [vmem:[#allocation5 + $0x1b0] sm:$0xff]  ;;  %v1286_v22 = vpack.c.bf16 %v105_v14, %v102_v13  ;;  %v146_v23 = vld [vmem:[#allocation5 + $0x200] sm:$0xff] }
  0x5e   :  { %1227 = vmatpush1.bf16.msra.mxu0 %v1226_v31  ;;  %1281 = vmatprep.subr.bf16.mxu1 %v1280_v0  ;;  %v139_v20 = vld [vmem:[#allocation5 + $0x1c8] sm:$0xff]  ;;  %v1288_v24 = vpack.c.bf16 %v159_v16, %v156_v15  ;;  %v108_v25 = vld [vmem:[#allocation5 + $0xd0] sm:$0xff]  ;;  %v162_v27 = vld [vmem:[#allocation5 + $0x280] sm:$0xff] }
  0x5f   :  { %1229 = vmatprep.subr.bf16.mxu0 %v1228_v32  ;;  %v143_v21 = vld [vmem:[#allocation5 + $0x1e8] sm:$0xff]  ;;  %v165_v28 = vld [vmem:[#allocation5 + $0x298] sm:$0xff]  ;;  %v1246_v29 = vpack.c.bf16 %v139_v20, %v136_v19  ;;  %v142_v31 = vld [vmem:[#allocation5 + $0x1e0] sm:$0xff] }
  0x60   :  { %v111_v26 = vld [vmem:[#allocation5 + $0xe8] sm:$0xff]  ;;  %v1248_v30 = vpack.c.bf16 %v146_v23, %v143_v21  ;;  %v145_v32 = vld [vmem:[#allocation5 + $0x1f8] sm:$0xff]  ;;  %v152_v35 = vld [vmem:[#allocation5 + $0x230] sm:$0xff]  ;;  %v1292_v36 = vpack.c.bf16 %v165_v28, %v162_v27 }
  0x61   :  { %1283 = vmatpush3.bf16.msra.mxu1 %v1282_v10  ;;  %v149_v33 = vld [vmem:[#allocation5 + $0x218] sm:$0xff]  ;;  %v1290_v34 = vpack.c.bf16 %v111_v26, %v108_v25  ;;  %v168_v39 = vld [vmem:[#allocation5 + $0x2b0] sm:$0xff]  ;;  %v171_v40 = vld [vmem:[#allocation5 + $0x2c8] sm:$0xff] }
  0x62   :  { %1231 = vmatpush1.bf16.msra.mxu0 %v1230_v37  ;;  %1285 = vmatprep.subr.bf16.mxu1 %v1284_v12  ;;  %v114_v37 = vld [vmem:[#allocation5 + $0x100] sm:$0xff]  ;;  %v117_v38 = vld [vmem:[#allocation5 + $0x118] sm:$0xff]  ;;  %v1252_v42 = vpack.c.bf16 %v152_v35, %v149_v33  ;;  %v148_v43 = vld [vmem:[#allocation5 + $0x210] sm:$0xff]  ;;  %v1296_v48 = vpack.c.bf16 %v171_v40, %v168_v39 }
  0x63   :  { %1233 = vmatprep.subr.bf16.mxu0 %v1232_v41  ;;  %v1250_v41 = vpack.c.bf16 %v145_v32, %v142_v31  ;;  %v151_v44 = vld [vmem:[#allocation5 + $0x228] sm:$0xff]  ;;  %v1294_v46 = vpack.c.bf16 %v117_v38, %v114_v37  ;;  %v158_v47 = vld [vmem:[#allocation5 + $0x260] sm:$0xff]  ;;  %v120_v49 = vld [vmem:[#allocation5 + $0x130] sm:$0xff] }
  0x64   :  { %v155_v45 = vld [vmem:[#allocation5 + $0x248] sm:$0xff]  ;;  %v174_v51 = vld [vmem:[#allocation5 + $0x2e0] sm:$0xff]  ;;  %v177_v52 = vld [vmem:[#allocation5 + $0x2f8] sm:$0xff] }
  0x65   :  { %1287 = vmatpush3.bf16.msra.mxu1 %v1286_v22  ;;  %v123_v50 = vld [vmem:[#allocation5 + $0x148] sm:$0xff]  ;;  %v1256_v54 = vpack.c.bf16 %v158_v47, %v155_v45  ;;  %v154_v55 = vld [vmem:[#allocation5 + $0x240] sm:$0xff]  ;;  %v157_v56 = vld [vmem:[#allocation5 + $0x258] sm:$0xff]  ;;  %v1300_v60 = vpack.c.bf16 %v177_v52, %v174_v51 }
  0x66   :  { %1235 = vmatpush1.bf16.msra.mxu0 %v1234_v53  ;;  %1289 = vmatprep.subr.bf16.mxu1 %v1288_v24  ;;  %v1254_v53 = vpack.c.bf16 %v151_v44, %v148_v43  ;;  %v161_v57 = vld [vmem:[#allocation5 + $0x278] sm:$0xff]  ;;  %v164_v59 = vld [vmem:[#allocation5 + $0x290] sm:$0xff]  ;;  %v126_v61 = vld [vmem:[#allocation5 + $0x160] sm:$0xff]  ;;  %v1258_v1 = vpack.c.bf16 %v157_v56, %v154_v55 }
  0x67   :  { %1237 = vmatprep.subr.bf16.mxu0 %v1236_v58  ;;  %v1298_v58 = vpack.c.bf16 %v123_v50, %v120_v49  ;;  %v129_v62 = vld [vmem:[#allocation5 + $0x178] sm:$0xff]  ;;  %v340_v63 = vld [vmem:[#allocation7 + $0x8] sm:$0xff]  ;;  %v343_v0 = vld [vmem:[#allocation7 + $0x20] sm:$0xff]  ;;  %v1260_v2 = vpack.c.bf16 %v164_v59, %v161_v57 }
  0x68   :  { %v160_v3 = vld [vmem:[#allocation5 + $0x270] sm:$0xff]  ;;  %v163_v4 = vld [vmem:[#allocation5 + $0x288] sm:$0xff]  ;;  %v170_v7 = vld [vmem:[#allocation5 + $0x2c0] sm:$0xff]  ;;  %v1304_v8 = vpack.c.bf16 %v343_v0, %v340_v63 }
  0x69   :  { %1291 = vmatpush3.bf16.msra.mxu1 %v1290_v34  ;;  %v339_v9 = vld [vmem:[#allocation7] sm:$0xff]  ;;  %v342_v10 = vld [vmem:[#allocation7 + $0x18] sm:$0xff]  ;;  %v349_v12 = vld [vmem:[#allocation7 + $0x50] sm:$0xff]  ;;  %v1262_v13 = vpack.c.bf16 %v163_v4, %v160_v3 }
  0x6a   :  { %1239 = vmatpush1.bf16.msra.mxu0 %v1238_v5  ;;  %1293 = vmatprep.subr.bf16.mxu1 %v1292_v36  ;;  %v167_v5 = vld [vmem:[#allocation5 + $0x2a8] sm:$0xff]  ;;  %v346_v11 = vld [vmem:[#allocation7 + $0x38] sm:$0xff]  ;;  %v166_v15 = vld [vmem:[#allocation5 + $0x2a0] sm:$0xff] }
  0x6b   :  { %1241 = vmatprep.subr.bf16.mxu0 %v1240_v6  ;;  %v1302_v6 = vpack.c.bf16 %v129_v62, %v126_v61  ;;  %v1264_v14 = vpack.c.bf16 %v170_v7, %v167_v5  ;;  %v169_v16 = vld [vmem:[#allocation5 + $0x2b8] sm:$0xff]  ;;  %v176_v19 = vld [vmem:[#allocation5 + $0x2f0] sm:$0xff]  ;;  %v1308_v20 = vpack.c.bf16 %v349_v12, %v346_v11  ;;  %v348_v22 = vld [vmem:[#allocation7 + $0x48] sm:$0xff] }
  0x6c   :  { %v345_v21 = vld [vmem:[#allocation7 + $0x30] sm:$0xff]  ;;  %v352_v24 = vld [vmem:[#allocation7 + $0x68] sm:$0xff]  ;;  %v355_v25 = vld [vmem:[#allocation7 + $0x80] sm:$0xff]  ;;  %v1266_v26 = vpack.c.bf16 %v169_v16, %v166_v15 }
  0x6d   :  { %1295 = vmatpush3.bf16.msra.mxu1 %v1294_v46  ;;  %v80_v23 = vld [vmem:[#allocation2] sm:$0xff]  ;;  %v351_v31 = vld [vmem:[#allocation7 + $0x60] sm:$0xff]  ;;  %v1312_v32 = vpack.c.bf16 %v355_v25, %v352_v24  ;;  %v354_v33 = vld [vmem:[#allocation7 + $0x78] sm:$0xff] }
  0x6e   :  { %1243 = vmatpush1.bf16.msra.mxu0 %v1242_v17  ;;  %1297 = vmatprep.subr.bf16.mxu1 %v1296_v48  ;;  %v173_v17 = vld [vmem:[#allocation5 + $0x2d8] sm:$0xff]  ;;  %v172_v28 = vld [vmem:[#allocation5 + $0x2d0] sm:$0xff]  ;;  %v392_v35 = vld [vmem:[#allocation7 + $0x1a8] sm:$0xff]  ;;  %v1314_v39 = vpack.c.bf16 %v354_v33, %v351_v31 }
  0x6f   :  { %1245 = vmatprep.subr.bf16.mxu0 %v1244_v18  ;;  %v1306_v18 = vpack.c.bf16 %v342_v10, %v339_v9  ;;  %v1268_v27 = vpack.c.bf16 %v176_v19, %v173_v17  ;;  %v389_v34 = vld [vmem:[#allocation7 + $0x190] sm:$0xff]  ;;  %v358_v36 = vld [vmem:[#allocation7 + $0x98] sm:$0xff]  ;;  %v344_v43 = vld [vmem:[#allocation7 + $0x28] sm:$0xff] }
  0x70   :  { %v361_v37 = vld [vmem:[#allocation7 + $0xb0] sm:$0xff]  ;;  %v360_v45 = vld [vmem:[#allocation7 + $0xa8] sm:$0xff]  ;;  %v395_v46 = vld [vmem:[#allocation7 + $0x1c0] sm:$0xff] }
  0x71   :  { %1299 = vmatpush3.bf16.msra.mxu1 %v1298_v58  ;;  %v357_v40 = vld [vmem:[#allocation7 + $0x90] sm:$0xff]  ;;  %v1316_v44 = vpack.c.bf16 %v361_v37, %v358_v36  ;;  %v398_v47 = vld [vmem:[#allocation7 + $0x1d8] sm:$0xff]  ;;  %v364_v48 = vld [vmem:[#allocation7 + $0xc8] sm:$0xff] }
  0x72   :  { %1247 = vmatpush1.bf16.msra.mxu0 %v1246_v29  ;;  %1301 = vmatprep.subr.bf16.mxu1 %v1300_v60  ;;  %v175_v29 = vld [vmem:[#allocation5 + $0x2e8] sm:$0xff]  ;;  %v367_v49 = vld [vmem:[#allocation7 + $0xe0] sm:$0xff]  ;;  %v1318_v51 = vpack.c.bf16 %v360_v45, %v357_v40  ;;  %v350_v55 = vld [vmem:[#allocation7 + $0x58] sm:$0xff] }
  0x73   :  { %1249 = vmatprep.subr.bf16.mxu0 %v1248_v30  ;;  %v1310_v30 = vpack.c.bf16 %v348_v22, %v345_v21  ;;  %v1270_v38 = vpack.c.bf16 %v175_v29, %v172_v28  ;;  %v363_v52 = vld [vmem:[#allocation7 + $0xc0] sm:$0xff]  ;;  %v1320_v56 = vpack.c.bf16 %v367_v49, %v364_v48  ;;  %v366_v57 = vld [vmem:[#allocation7 + $0xd8] sm:$0xff]  ;;  %v401_v58 = vld [vmem:[#allocation7 + $0x1f0] sm:$0xff] }
  0x74   :  { %v404_v59 = vld [vmem:[#allocation7 + $0x208] sm:$0xff]  ;;  %v370_v60 = vld [vmem:[#allocation7 + $0xf8] sm:$0xff]  ;;  %v373_v61 = vld [vmem:[#allocation7 + $0x110] sm:$0xff]  ;;  %v1322_v63 = vpack.c.bf16 %v366_v57, %v363_v52 }
  0x75   :  { %1303 = vmatpush3.bf16.msra.mxu1 %v1302_v6  ;;  %v369_v0 = vld [vmem:[#allocation7 + $0xf0] sm:$0xff]  ;;  %v356_v3 = vld [vmem:[#allocation7 + $0x88] sm:$0xff]  ;;  %v1324_v4 = vpack.c.bf16 %v373_v61, %v370_v60  ;;  %v407_v6 = vld [vmem:[#allocation7 + $0x220] sm:$0xff] }
  0x76   :  { %1251 = vmatpush1.bf16.msra.mxu0 %v1250_v41  ;;  %1305 = vmatprep.subr.bf16.mxu1 %v1304_v8  ;;  %v1400_v41 = vpack.c.bf16 %v392_v35, %v389_v34  ;;  %v372_v5 = vld [vmem:[#allocation7 + $0x108] sm:$0xff]  ;;  %v410_v7 = vld [vmem:[#allocation7 + $0x238] sm:$0xff]  ;;  %v379_v9 = vld [vmem:[#allocation7 + $0x140] sm:$0xff] }
  0x77   :  { %1253 = vmatprep.subr.bf16.mxu0 %v1252_v42  ;;  %v341_v42 = vld [vmem:[#allocation7 + $0x10] sm:$0xff]  ;;  %v376_v8 = vld [vmem:[#allocation7 + $0x128] sm:$0xff]  ;;  %v1326_v11 = vpack.c.bf16 %v372_v5, %v369_v0  ;;  %v375_v12 = vld [vmem:[#allocation7 + $0x120] sm:$0xff] }
  0x78   :  { %331 = vmatmul.mubr.f32.vlgmr.msra.gmra.mrb[0].mxu1 %v80_v23  ;;  %v1402_v50 = vpack.c.bf16 %v344_v43, %v341_v42  ;;  %v362_v15 = vld [vmem:[#allocation7 + $0xb8] sm:$0xff]  ;;  %v1328_v16 = vpack.c.bf16 %v379_v9, %v376_v8  ;;  %v416_v19 = vld [vmem:[#allocation7 + $0x268] sm:$0xff]  ;;  %v385_v21 = vld [vmem:[#allocation7 + $0x170] sm:$0xff] }
  0x79   :  { %1307 = vmatpush1.bf16.msra.mxu1 %v1306_v18  ;;  %v378_v17 = vld [vmem:[#allocation7 + $0x138] sm:$0xff]  ;;  %v413_v18 = vld [vmem:[#allocation7 + $0x250] sm:$0xff]  ;;  %v384_v29 = vld [vmem:[#allocation7 + $0x168] sm:$0xff] }
  0x7a   :  { %1255 = vmatpush1.bf16.msra.mxu0 %v1254_v53  ;;  %1309 = vmatprep.subr.bf16.mxu1 %v1308_v20  ;;  %v1404_v53 = vpack.c.bf16 %v398_v47, %v395_v46  ;;  %v382_v20 = vld [vmem:[#allocation7 + $0x158] sm:$0xff]  ;;  %v381_v24 = vld [vmem:[#allocation7 + $0x150] sm:$0xff]  ;;  %v1416_v25 = vpack.c.bf16 %v416_v19, %v413_v18  ;;  %v391_v33 = vld [vmem:[#allocation7 + $0x1a0] sm:$0xff] }
  0x7b   :  { %1257 = vmatprep.subr.bf16.mxu0 %v1256_v54  ;;  %v347_v54 = vld [vmem:[#allocation7 + $0x40] sm:$0xff]  ;;  %v1332_v28 = vpack.c.bf16 %v385_v21, %v382_v20  ;;  %v422_v31 = vld [vmem:[#allocation7 + $0x298] sm:$0xff]  ;;  %v1334_v35 = vpack.c.bf16 %v384_v29, %v381_v24  ;;  %v425_v42 = vld [vmem:[#allocation7 + $0x2b0] sm:$0xff] }
  0x7c   :  { %v1406_v62 = vpack.c.bf16 %v350_v55, %v347_v54  ;;  %v387_v36 = vld [vmem:[#allocation7 + $0x180] sm:$0xff]  ;;  %v428_v43 = vld [vmem:[#allocation7 + $0x2c8] sm:$0xff]  ;;  %v397_v45 = vld [vmem:[#allocation7 + $0x1d0] sm:$0xff] }
  0x7d   :  { %1311 = vmatpush1.bf16.msra.mxu1 %v1310_v30  ;;  %v419_v30 = vld [vmem:[#allocation7 + $0x280] sm:$0xff]  ;;  %v1424_v48 = vpack.c.bf16 %v428_v43, %v425_v42  ;;  %v377_v49 = vld [vmem:[#allocation7 + $0x130] sm:$0xff]  ;;  %v400_v54 = vld [vmem:[#allocation7 + $0x1e8] sm:$0xff] }
  0x7e   :  { %1259 = vmatpush1.bf16.msra.mxu0 %v1258_v1  ;;  %1313 = vmatprep.subr.bf16.mxu1 %v1312_v32  ;;  %v1408_v1 = vpack.c.bf16 %v404_v59, %v401_v58  ;;  %v388_v32 = vld [vmem:[#allocation7 + $0x188] sm:$0xff]  ;;  %v1420_v37 = vpack.c.bf16 %v422_v31, %v419_v30  ;;  %v393_v52 = vld [vmem:[#allocation7 + $0x1b0] sm:$0xff]  ;;  %v403_v55 = vld [vmem:[#allocation7 + $0x200] sm:$0xff] }
  0x7f   :  { %1261 = vmatprep.subr.bf16.mxu0 %v1260_v2  ;;  %v353_v2 = vld [vmem:[#allocation7 + $0x70] sm:$0xff]  ;;  %v1336_v40 = vpack.c.bf16 %v391_v33, %v388_v32  ;;  %v1344_v58 = vpack.c.bf16 %v403_v55, %v400_v54  ;;  %v399_v59 = vld [vmem:[#allocation7 + $0x1e0] sm:$0xff]  ;;  %v402_v60 = vld [vmem:[#allocation7 + $0x1f8] sm:$0xff] }
  0x80   :  { %v1410_v10 = vpack.c.bf16 %v356_v3, %v353_v2  ;;  %v406_v61 = vld [vmem:[#allocation7 + $0x218] sm:$0xff]  ;;  %v408_v2 = vld [vmem:[#allocation7 + $0x228] sm:$0xff]  ;;  %v423_v19 = vld [vmem:[#allocation7 + $0x2a0] sm:$0xff] }
  0x81   :  { %1315 = vmatpush1.bf16.msra.mxu1 %v1314_v39  ;;  %v374_v39 = vld [vmem:[#allocation7 + $0x118] sm:$0xff]  ;;  %v412_v3 = vld [vmem:[#allocation7 + $0x248] sm:$0xff]  ;;  %v431_v24 = vld [vmem:[#allocation7 + $0x2e0] sm:$0xff] }
  0x82   :  { %1263 = vmatpush1.bf16.msra.mxu0 %v1262_v13  ;;  %1317 = vmatprep.subr.bf16.mxu1 %v1316_v44  ;;  %v1412_v13 = vpack.c.bf16 %v410_v7, %v407_v6  ;;  %v394_v44 = vld [vmem:[#allocation7 + $0x1b8] sm:$0xff]  ;;  %v411_v7 = vld [vmem:[#allocation7 + $0x240] sm:$0xff]  ;;  %v440_v54 = vld [vmem:[#allocation7 + $0x328] sm:$0xff] }
  0x83   :  { %1265 = vmatprep.subr.bf16.mxu0 %v1264_v14  ;;  %v359_v14 = vld [vmem:[#allocation7 + $0xa0] sm:$0xff]  ;;  %v414_v8 = vld [vmem:[#allocation7 + $0x258] sm:$0xff] }
  0x84   :  { %v1414_v22 = vpack.c.bf16 %v362_v15, %v359_v14  ;;  %v418_v9 = vld [vmem:[#allocation7 + $0x278] sm:$0xff]  ;;  %v420_v14 = vld [vmem:[#allocation7 + $0x288] sm:$0xff]  ;;  %v383_v31 = vld [vmem:[#allocation7 + $0x160] sm:$0xff] }
  0x85   :  { %1319 = vmatpush1.bf16.msra.mxu1 %v1318_v51  ;;  %v1340_v51 = vpack.c.bf16 %v397_v45, %v394_v44  ;;  %v424_v15 = vld [vmem:[#allocation7 + $0x2a8] sm:$0xff]  ;;  %v426_v20 = vld [vmem:[#allocation7 + $0x2b8] sm:$0xff]  ;;  %v1761_v44 = vld [vmem:[%s1821_s2] sm:$0x7] }
  0x86   :  { %1267 = vmatpush1.bf16.msra.mxu0 %v1266_v26  ;;  %1321 = vmatprep.subr.bf16.mxu1 %v1320_v56  ;;  %v365_v26 = vld [vmem:[#allocation7 + $0xd0] sm:$0xff]  ;;  %v1362_v21 = vpack.c.bf16 %v426_v20, %v423_v19  ;;  %v386_v32 = vld [vmem:[#allocation7 + $0x178] sm:$0xff]  ;;  %v456_v19 = vld [vmem:[#allocation7 + $0x3a8] sm:$0xff] }
  0x87   :  { %1269 = vmatprep.subr.bf16.mxu0 %v1268_v27  ;;  %v368_v27 = vld [vmem:[#allocation7 + $0xe8] sm:$0xff]  ;;  %v1430_v33 = vpack.c.bf16 %v386_v32, %v383_v31  ;;  %v455_v20 = vld [vmem:[#allocation7 + $0x3a0] sm:$0xff]  ;;  %v466_v31 = vld [vmem:[#allocation7 + $0x3f8] sm:$0xff] }
  0x88   :  { %v1418_v34 = vpack.c.bf16 %v368_v27, %v365_v26  ;;  %v434_v26 = vld [vmem:[#allocation7 + $0x2f8] sm:$0xff]  ;;  %v429_v27 = vld [vmem:[#allocation7 + $0x2d0] sm:$0xff] }
  0x89   :  { %1323 = vmatpush1.bf16.msra.mxu1 %v1322_v63  ;;  %v1346_v63 = vpack.c.bf16 %v402_v60, %v399_v59  ;;  %v1428_v29 = vpack.c.bf16 %v434_v26, %v431_v24  ;;  %v459_v26 = vld [vmem:[#allocation7 + $0x3c0] sm:$0xff]  ;;  %v469_v32 = vld [vmem:[#allocation7 + $0x410] sm:$0xff] }
  0x8a   :  { %1271 = vmatpush1.bf16.msra.mxu0 %v1270_v38  ;;  %1325 = vmatprep.subr.bf16.mxu1 %v1324_v4  ;;  %v371_v38 = vld [vmem:[#allocation7 + $0x100] sm:$0xff] }
  0x8b   :  { %1401 = vmatprep.subr.bf16.mxu0 %v1400_v41  ;;  %v390_v41 = vld [vmem:[#allocation7 + $0x198] sm:$0xff]  ;;  %v1422_v46 = vpack.c.bf16 %v374_v39, %v371_v38  ;;  %v415_v4 = vld [vmem:[#allocation7 + $0x260] sm:$0xff]  ;;  %v180_v38 = vlaneseq }
  0x8c   :  { %v1338_v47 = vpack.c.bf16 %v390_v41, %v387_v36  ;;  %v1352_v6 = vpack.c.bf16 %v415_v4, %v412_v3  ;;  %v448_v3 = vld [vmem:[#allocation7 + $0x368] sm:$0xff]  ;;  %v451_v4 = vld [vmem:[#allocation7 + $0x380] sm:$0xff] }
  0x8d   :  { %260 = vmatmul.mubr.f32.vlgmr.msra.gmra.mrb[0].mxu0 %v80_v23  ;;  %1327 = vmatpush1.bf16.msra.mxu1 %v1326_v11  ;;  %v1330_v23 = vpack.c.bf16 %v378_v17, %v375_v12  ;;  %v1354_v11 = vpack.c.bf16 %v414_v8, %v411_v7  ;;  %v1753_v39 = vshrl.u32 %v180_v38, 7  ;;  %v447_v7 = vld [vmem:[#allocation7 + $0x360] sm:$0xff]  ;;  %v1376_v8 = vpack.c.bf16 %v451_v4, %v448_v3  ;;  %v468_v38 = vld [vmem:[#allocation7 + $0x408] sm:$0xff] }
  0x8e   :  { %1403 = vmatpush3.bf16.msra.mxu0 %v1402_v50  ;;  %1329 = vmatprep.subr.bf16.mxu1 %v1328_v16  ;;  %v380_v50 = vld [vmem:[#allocation7 + $0x148] sm:$0xff]  ;;  %v427_v16 = vld [vmem:[#allocation7 + $0x2c0] sm:$0xff] }
  0x8f   :  { %1405 = vmatprep.subr.bf16.mxu0 %v1404_v53  ;;  %v396_v53 = vld [vmem:[#allocation7 + $0x1c8] sm:$0xff]  ;;  %v1426_v56 = vpack.c.bf16 %v380_v50, %v377_v49  ;;  %v1360_v18 = vpack.c.bf16 %v427_v16, %v424_v15  ;;  %v182_v43 = vsub.s32 0, %v1753_v39  ;;  %v186_v45 = vsub.s32 1, %v1753_v39  ;;  %v435_v49 = vld [vmem:[#allocation7 + $0x300] sm:$0xff] }
  0x90   :  { %v1342_v57 = vpack.c.bf16 %v396_v53, %v393_v52  ;;  %v438_v52 = vld [vmem:[#allocation7 + $0x318] sm:$0xff]  ;;  %v437_v53 = vld [vmem:[#allocation7 + $0x310] sm:$0xff] }
  0x91   :  { %1331 = vmatpush1.bf16.msra.mxu1 %v1330_v23  ;;  %v433_v23 = vld [vmem:[#allocation7 + $0x2f0] sm:$0xff]  ;;  %v1370_v59 = vpack.c.bf16 %v438_v52, %v435_v49  ;;  %v1433_v60 = vpack.c.bf16 %v440_v54, %v437_v53  ;;  %v474_v53 = vld [vmem:[#allocation7 + $0x438] sm:$0xff] }
  0x92   :  { %1407 = vmatpush3.bf16.msra.mxu0 %v1406_v62  ;;  %1333 = vmatprep.subr.bf16.mxu1 %v1332_v28  ;;  %v409_v62 = vld [vmem:[#allocation7 + $0x230] sm:$0xff]  ;;  %v432_v28 = vld [vmem:[#allocation7 + $0x2e8] sm:$0xff] }
  0x93   :  { %1409 = vmatprep.subr.bf16.mxu0 %v1408_v1  ;;  %v1348_v0 = vpack.c.bf16 %v409_v62, %v406_v61  ;;  %v405_v1 = vld [vmem:[#allocation7 + $0x210] sm:$0xff]  ;;  %v1366_v30 = vpack.c.bf16 %v432_v28, %v429_v27  ;;  %v462_v28 = vld [vmem:[#allocation7 + $0x3d8] sm:$0xff] }
  0x94   :  { %v1350_v5 = vpack.c.bf16 %v408_v2, %v405_v1  ;;  %v441_v61 = vld [vmem:[#allocation7 + $0x330] sm:$0xff]  ;;  %v443_v1 = vld [vmem:[#allocation7 + $0x340] sm:$0xff]  ;;  %v446_v2 = vld [vmem:[#allocation7 + $0x358] sm:$0xff] }
  0x95   :  { %1335 = vmatpush1.bf16.msra.mxu1 %v1334_v35  ;;  %v439_v35 = vld [vmem:[#allocation7 + $0x320] sm:$0xff]  ;;  %v473_v54 = vld [vmem:[#allocation7 + $0x430] sm:$0xff] }
  0x96   :  { %1411 = vmatpush3.bf16.msra.mxu0 %v1410_v10  ;;  %1337 = vmatprep.subr.bf16.mxu1 %v1336_v40  ;;  %v421_v10 = vld [vmem:[#allocation7 + $0x290] sm:$0xff] }
  0x97   :  { %1413 = vmatprep.subr.bf16.mxu0 %v1412_v13  ;;  %v1356_v12 = vpack.c.bf16 %v421_v10, %v418_v9  ;;  %v417_v13 = vld [vmem:[#allocation7 + $0x270] sm:$0xff]  ;;  %v450_v9 = vld [vmem:[#allocation7 + $0x378] sm:$0xff] }
  0x98   :  { %v1358_v17 = vpack.c.bf16 %v420_v14, %v417_v13  ;;  %v449_v10 = vld [vmem:[#allocation7 + $0x370] sm:$0xff]  ;;  %v1655_v14 = vmov 0.0   ;;  %v1378_v15 = vpack.c.bf16 %v450_v9, %v447_v7  ;;  %v785_v9 = vld [vmem:[#allocation8] sm:$0xff] }
  0x99   :  { %1339 = vmatpush1.bf16.msra.mxu1 %v1338_v47  ;;  %v187_v47 = vrot.slane %v1761_v44, %v186_v45  ;;  %v457_v13 = vld [vmem:[#allocation7 + $0x3b0] sm:$0xff] }
  0x9a   :  { %1415 = vmatpush3.bf16.msra.mxu0 %v1414_v22  ;;  %1341 = vmatprep.subr.bf16.mxu1 %v1340_v51  ;;  %v430_v22 = vld [vmem:[#allocation7 + $0x2d8] sm:$0xff] }
  0x9b   :  { %1417 = vmatprep.subr.bf16.mxu0 %v1416_v25  ;;  %v1364_v25 = vpack.c.bf16 %v433_v23, %v430_v22  ;;  %v460_v22 = vld [vmem:[#allocation7 + $0x3c8] sm:$0xff]  ;;  %v463_v23 = vld [vmem:[#allocation7 + $0x3e0] sm:$0xff] }
  0x9c   :  { %v1384_v27 = vpack.c.bf16 %v463_v23, %v460_v22  ;;  %v822_v22 = vld [vmem:[#allocation8 + $0x128] sm:$0xff]  ;;  %v805_v23 = vld [vmem:[#allocation8 + $0xa0] sm:$0xff] }
  0x9d   :  { %1343 = vmatpush1.bf16.msra.mxu1 %v1342_v57  ;;  %v445_v57 = vld [vmem:[#allocation7 + $0x350] sm:$0xff] }
  0x9e   :  { %1419 = vmatpush3.bf16.msra.mxu0 %v1418_v34  ;;  %1345 = vmatprep.subr.bf16.mxu1 %v1344_v58  ;;  %v436_v34 = vld [vmem:[#allocation7 + $0x308] sm:$0xff] }
  0x9f   :  { %1421 = vmatprep.subr.bf16.mxu0 %v1420_v37  ;;  %v1368_v36 = vpack.c.bf16 %v439_v35, %v436_v34  ;;  %v1654_v37 = vmov 0.0|0.0   ;;  %v465_v35 = vld [vmem:[#allocation7 + $0x3f0] sm:$0xff] }
  0xa0   :  { %v1390_v49 = vpack.c.bf16 %v468_v38, %v465_v35  ;;  %v792_v38 = vld [vmem:[#allocation8 + $0x38] sm:$0xff] }
  0xa1   :  { %1347 = vmatpush1.bf16.msra.mxu1 %v1346_v63 }
  0xa2   :  { %1423 = vmatpush3.bf16.msra.mxu0 %v1422_v46  ;;  %1349 = vmatprep.subr.bf16.mxu1 %v1348_v0  ;;  %v183_v46 = vrot.slane %v1761_v44, %v182_v43  ;;  %v444_v0 = vld [vmem:[#allocation7 + $0x348] sm:$0xff] }
  0xa3   :  { %1425 = vmatprep.subr.bf16.mxu0 %v1424_v48 }
  0xa5   :  { %1351 = vmatpush1.bf16.msra.mxu1 %v1350_v5  ;;  %v1374_v5 = vpack.c.bf16 %v444_v0, %v441_v61  ;;  %v477_v61 = vld [vmem:[#allocation7 + $0x450] sm:$0xff]  ;;  %v479_v0 = vld [vmem:[#allocation7 + $0x460] sm:$0xff] }
  0xa6   :  { %1427 = vmatpush3.bf16.msra.mxu0 %v1426_v56  ;;  %1353 = vmatprep.subr.bf16.mxu1 %v1352_v6  ;;  %v442_v56 = vld [vmem:[#allocation7 + $0x338] sm:$0xff]  ;;  %v1436_v6 = vpack.c.bf16 %v446_v2, %v443_v1 }
  0xa7   :  { %1429 = vmatprep.subr.bf16.mxu0 %v1428_v29  ;;  %v1372_v63 = vpack.c.bf16 %v445_v57, %v442_v56  ;;  %v461_v29 = vld [vmem:[#allocation7 + $0x3d0] sm:$0xff]  ;;  %v478_v56 = vld [vmem:[#allocation7 + $0x458] sm:$0xff] }
  0xa8   :  { %v481_v57 = vld [vmem:[#allocation7 + $0x470] sm:$0xff]  ;;  %v482_v1 = vld [vmem:[#allocation7 + $0x478] sm:$0xff] }
  0xa9   :  { %1355 = vmatpush1.bf16.msra.mxu1 %v1354_v11  ;;  %v452_v11 = vld [vmem:[#allocation7 + $0x388] sm:$0xff]  ;;  %v1454_v4 = vpack.c.bf16 %v482_v1, %v479_v0  ;;  %v813_v0 = vld [vmem:[#allocation8 + $0xe0] sm:$0xff] }
  0xaa   :  { %1357 = vmatprep.subr.bf16.mxu1 %v1356_v12  ;;  %1431 = vmatpush3.bf16.msra.mxu0 %v1430_v33  ;;  %v454_v12 = vld [vmem:[#allocation7 + $0x398] sm:$0xff]  ;;  %v1439_v16 = vpack.c.bf16 %v452_v11, %v449_v10  ;;  %v1386_v33 = vpack.c.bf16 %v462_v28, %v459_v26  ;;  %v786_v10 = vld [vmem:[#allocation8 + $0x8] sm:$0xff] }
  0xab   :  { %1432 = vmatprep.subr.bf16.mxu0 %v1654_v37  ;;  %v790_v28 = vld [vmem:[#allocation8 + $0x28] sm:$0xff] }
  0xac   :  { %v814_v1 = vld [vmem:[#allocation8 + $0xe8] sm:$0xff] }
  0xad   :  { %1359 = vmatpush1.bf16.msra.mxu1 %v1358_v17  ;;  %v453_v17 = vld [vmem:[#allocation7 + $0x390] sm:$0xff] }
  0xae   :  { %1361 = vmatprep.subr.bf16.mxu1 %v1360_v18  ;;  %v1380_v18 = vpack.c.bf16 %v457_v13, %v454_v12  ;;  %v1382_v24 = vpack.c.bf16 %v456_v19, %v453_v17  ;;  %v1458_v12 = vpack.c.bf16 %v786_v10, %v785_v9  ;;  %v819_v13 = vld [vmem:[#allocation8 + $0x110] sm:$0xff]  ;;  %v832_v9 = vld [vmem:[#allocation8 + $0x178] sm:$0xff] }
  0xaf   :  { %v787_v19 = vld [vmem:[#allocation8 + $0x10] sm:$0xff] }
  0xb1   :  { %1363 = vmatpush1.bf16.msra.mxu1 %v1362_v21  ;;  %v458_v21 = vld [vmem:[#allocation7 + $0x3b8] sm:$0xff] }
  0xb2   :  { %1365 = vmatprep.subr.bf16.mxu1 %v1364_v25  ;;  %v1442_v25 = vpack.c.bf16 %v458_v21, %v455_v20  ;;  %v788_v20 = vld [vmem:[#allocation8 + $0x18] sm:$0xff]  ;;  %v821_v21 = vld [vmem:[#allocation8 + $0x120] sm:$0xff] }
  0xb5   :  { %1367 = vmatpush1.bf16.msra.mxu1 %v1366_v30  ;;  %v464_v30 = vld [vmem:[#allocation7 + $0x3e8] sm:$0xff] }
  0xb6   :  { %1369 = vmatprep.subr.bf16.mxu1 %v1368_v36  ;;  %v1445_v34 = vpack.c.bf16 %v464_v30, %v461_v29  ;;  %v1388_v36 = vpack.c.bf16 %v469_v32, %v466_v31  ;;  %v1495_v29 = vpack.c.bf16 %v822_v22, %v821_v21  ;;  %v807_v30 = vld [vmem:[#allocation8 + $0xb0] sm:$0xff]  ;;  %v808_v31 = vld [vmem:[#allocation8 + $0xb8] sm:$0xff] }
  0xb7   :  { %v823_v32 = vld [vmem:[#allocation8 + $0x130] sm:$0xff]  ;;  %v1468_v35 = vpack.c.bf16 %v808_v31, %v807_v30 }
 0x14b   :  { %v1031_v40 = vpop.f32.mrb[0].mxu1 }
 0x14c   :  { %v1032_v41 = vpop.f32.mrb[1].mxu1 }
 0x14d   :  { %v1755_v42 = vadd.f32 %v1032_v41, %v1031_v40  ;;  %v467_v40 = vld [vmem:[#allocation7 + $0x400] sm:$0xff]  ;;  %v470_v41 = vld [vmem:[#allocation7 + $0x418] sm:$0xff] }
 0x160   :  { %v261_v48 = vpop.f32.mrb[0].mxu0 }
 0x161   :  { %v262_v50 = vadd.f32 %v261_v48, %v183_v46  ;;  %v263_v51 = vpop.f32.mrb[1].mxu0  ;;  %v472_v46 = vld [vmem:[#allocation7 + $0x428] sm:$0xff]  ;;  %v190_v48 = vsub.s32 2, %v1753_v39  ;;  %v998_v39 = vld [vmem:[%s1825_s6] ss:$0 sm:$0xff] }
 0x162   :  { %v264_v55 = vadd.f32 %v263_v51, %v187_v47  ;;  %v475_v47 = vld [vmem:[#allocation7 + $0x440] sm:$0xff] }
 0x163   :  { %v336_v62 = vmax.f32 %v262_v50, 0.0  ;;  %v1448_v50 = vpack.c.bf16 %v470_v41, %v467_v40  ;;  %v471_v51 = vld [vmem:[#allocation7 + $0x420] sm:$0xff]  ;;  %v1392_v52 = vpack.c.bf16 %v475_v47, %v472_v46  ;;  %v810_v46 = vld [vmem:[#allocation8 + $0xc8] sm:$0xff] }
 0x164   :  { %v337_v58 = vmax.f32 %v264_v55, 0.0  ;;  %v476_v55 = vld [vmem:[#allocation7 + $0x448] sm:$0xff]  ;;  %v809_v41 = vld [vmem:[#allocation8 + $0xc0] sm:$0xff] }
 0x165   :  { %v825_v47 = vld [vmem:[#allocation8 + $0x140] sm:$0xff] }
 0x166   :  { %564 = vmatprep.mubr.f32.mxu1 %v337_v58  ;;  %706 = vmatprep.mubr.f32.mxu0 %v337_v58  ;;  %v191_v58 = vrot.slane %v1761_v44, %v190_v48 }
 0x167   :  { %565 = vmatmul.mubr.f32.vlgmr.msra.gmra.mrb[2].mxu1 %v336_v62  ;;  %707 = vmatmul.mubr.f32.vlgmr.msra.gmra.mrb[2].mxu0 %v336_v62  ;;  %v1396_v62 = vpack.c.bf16 %v481_v57, %v478_v56  ;;  %v812_v56 = vld [vmem:[#allocation8 + $0xd8] sm:$0xff]  ;;  %v827_v57 = vld [vmem:[#allocation8 + $0x150] sm:$0xff] }
 0x168   :  { %1371 = vmatpush1.bf16.msra.mxu1 %v1370_v59  ;;  %1434 = vmatpush3.bf16.msra.mxu0 %v1433_v60  ;;  %v1394_v59 = vpack.c.bf16 %v474_v53, %v471_v51  ;;  %v1451_v60 = vpack.c.bf16 %v476_v55, %v473_v54  ;;  %v333_v2 = vadd.f32 %v1755_v42, %v191_v58  ;;  %v801_v42 = vld [vmem:[#allocation8 + $0x80] sm:$0xff]  ;;  %v794_v53 = vld [vmem:[#allocation8 + $0x48] sm:$0xff]  ;;  %v811_v55 = vld [vmem:[#allocation8 + $0xd0] sm:$0xff] }
 0x169   :  { %1373 = vmatprep.subr.bf16.mxu1 %v1372_v63  ;;  %1435 = vmatprep.subr.bf16.mxu0 %v1654_v37  ;;  %v480_v63 = vld [vmem:[#allocation7 + $0x468] sm:$0xff]  ;;  %v1472_v51 = vpack.c.bf16 %v810_v46, %v809_v41  ;;  %v828_v58 = vld [vmem:[#allocation8 + $0x158] sm:$0xff] }
 0x16a   :  { %635 = vmatprep.mubr.f32.mxu1 %v1655_v14  ;;  %1170 = vmatprep.mubr.msk.f32.mxu0 %vm1656_vm0, %v1655_v14  ;;  %v1398_v3 = vpack.c.bf16 %v480_v63, %v477_v61  ;;  %v338_v44 = vmax.f32 %v333_v2, 0.0  ;;  %v795_v61 = vld [vmem:[#allocation8 + $0x50] sm:$0xff]  ;;  %v1504_v63 = vpack.c.bf16 %v828_v58, %v827_v57  ;;  %v829_v2 = vld [vmem:[#allocation8 + $0x160] sm:$0xff] }
 0x16c   :  { %1375 = vmatpush1.bf16.msra.mxu1 %v1374_v5  ;;  %1437 = vmatpush3.bf16.msra.mxu0 %v1436_v6  ;;  %v817_v5 = vld [vmem:[#allocation8 + $0x100] sm:$0xff]  ;;  %v818_v6 = vld [vmem:[#allocation8 + $0x108] sm:$0xff] }
 0x16d   :  { %1377 = vmatprep.subr.bf16.mxu1 %v1376_v8  ;;  %1438 = vmatprep.subr.bf16.mxu0 %v1654_v37  ;;  %v1489_v7 = vpack.c.bf16 %v818_v6, %v817_v5  ;;  %v802_v8 = vld [vmem:[#allocation8 + $0x88] sm:$0xff]  ;;  %v797_v6 = vld [vmem:[#allocation8 + $0x60] sm:$0xff] }
 0x16e   :  { %v1456_v11 = vpack.c.bf16 %v802_v8, %v801_v42  ;;  %v798_v42 = vld [vmem:[#allocation8 + $0x68] sm:$0xff]  ;;  %v831_v8 = vld [vmem:[#allocation8 + $0x170] sm:$0xff] }
 0x16f   :  { %v1510_v10 = vpack.c.bf16 %v832_v9, %v831_v8 }
 0x170   :  { %1379 = vmatpush1.bf16.msra.mxu1 %v1378_v15  ;;  %1440 = vmatpush3.bf16.msra.mxu0 %v1439_v16  ;;  %v820_v15 = vld [vmem:[#allocation8 + $0x118] sm:$0xff]  ;;  %v803_v16 = vld [vmem:[#allocation8 + $0x90] sm:$0xff] }
 0x171   :  { %1381 = vmatprep.subr.bf16.mxu1 %v1380_v18  ;;  %1441 = vmatprep.subr.bf16.mxu0 %v1654_v37  ;;  %v1492_v17 = vpack.c.bf16 %v820_v15, %v819_v13  ;;  %v804_v18 = vld [vmem:[#allocation8 + $0x98] sm:$0xff]  ;;  %v799_v15 = vld [vmem:[#allocation8 + $0x70] sm:$0xff] }
 0x174   :  { %1383 = vmatpush1.bf16.msra.mxu1 %v1382_v24  ;;  %1443 = vmatpush3.bf16.msra.mxu0 %v1442_v25  ;;  %v1462_v24 = vpack.c.bf16 %v788_v20, %v787_v19  ;;  %v806_v25 = vld [vmem:[#allocation8 + $0xa8] sm:$0xff] }
 0x175   :  { %1385 = vmatprep.subr.bf16.mxu1 %v1384_v27  ;;  %1444 = vmatprep.subr.bf16.mxu0 %v1654_v37  ;;  %v1464_v26 = vpack.c.bf16 %v806_v25, %v805_v23  ;;  %v789_v27 = vld [vmem:[#allocation8 + $0x20] sm:$0xff] }
 0x178   :  { %1387 = vmatpush1.bf16.msra.mxu1 %v1386_v33  ;;  %1446 = vmatpush3.bf16.msra.mxu0 %v1445_v34  ;;  %v824_v33 = vld [vmem:[#allocation8 + $0x138] sm:$0xff]  ;;  %v1466_v34 = vpack.c.bf16 %v790_v28, %v789_v27 }
 0x179   :  { %1389 = vmatprep.subr.bf16.mxu1 %v1388_v36  ;;  %1447 = vmatprep.subr.bf16.mxu0 %v1654_v37  ;;  %v791_v36 = vld [vmem:[#allocation8 + $0x30] sm:$0xff]  ;;  %v1498_v40 = vpack.c.bf16 %v824_v33, %v823_v32 }
 0x17c   :  { %1391 = vmatpush1.bf16.msra.mxu1 %v1390_v49  ;;  %1449 = vmatpush3.bf16.msra.mxu0 %v1448_v50  ;;  %v826_v49 = vld [vmem:[#allocation8 + $0x148] sm:$0xff]  ;;  %v1470_v50 = vpack.c.bf16 %v792_v38, %v791_v36 }
 0x17d   :  { %1393 = vmatprep.subr.bf16.mxu1 %v1392_v52  ;;  %1450 = vmatprep.subr.bf16.mxu0 %v1654_v37  ;;  %v793_v52 = vld [vmem:[#allocation8 + $0x40] sm:$0xff]  ;;  %v1501_v54 = vpack.c.bf16 %v826_v49, %v825_v47 }
 0x180   :  { %1395 = vmatpush1.bf16.msra.mxu1 %v1394_v59  ;;  %1452 = vmatpush3.bf16.msra.mxu0 %v1451_v60  ;;  %v1474_v59 = vpack.c.bf16 %v794_v53, %v793_v52  ;;  %v1476_v60 = vpack.c.bf16 %v812_v56, %v811_v55 }
 0x181   :  { %1397 = vmatprep.subr.bf16.mxu1 %v1396_v62  ;;  %1453 = vmatprep.subr.bf16.mxu0 %v1654_v37  ;;  %v796_v62 = vld [vmem:[#allocation8 + $0x58] sm:$0xff] }
 0x184   :  { %1399 = vmatpush1.bf16.msra.mxu1 %v1398_v3  ;;  %1455 = vmatpush3.bf16.msra.mxu0 %v1454_v4  ;;  %v830_v3 = vld [vmem:[#allocation8 + $0x168] sm:$0xff]  ;;  %v1478_v4 = vpack.c.bf16 %v796_v62, %v795_v61 }
 0x185   :  { %1488 = vmatprep.subr.bf16.mxu1 %v1654_v37  ;;  %1457 = vmatprep.subr.bf16.mxu0 %v1456_v11  ;;  %v1507_v5 = vpack.c.bf16 %v830_v3, %v829_v2  ;;  %v815_v11 = vld [vmem:[#allocation8 + $0xf0] sm:$0xff] }
 0x187   :  { %636 = vmatmul.mubr.f32.vlgmr.msra.gmra.mrb[2].mxu1 %v338_v44  ;;  %1171 = vmatmul.mubr.f32.vlgmr.msra.gmra.mrb[4].mxu0 %v338_v44  ;;  %v1480_v44 = vpack.c.bf16 %v814_v1, %v813_v0 }
 0x188   :  { %1205 = vmatprep.mubr.msk.f32.mxu1 %vm1656_vm0, %v1655_v14  ;;  %1490 = vmatpush3.bf16.msra.mxu1 %v1489_v7  ;;  %v1460_v14 = vpack.c.bf16 %v804_v18, %v803_v16  ;;  %v1482_v7 = vpack.c.bf16 %v798_v42, %v797_v6  ;;  %v800_v16 = vld [vmem:[#allocation8 + $0x78] sm:$0xff] }
 0x189   :  { %1491 = vmatprep.subr.bf16.mxu1 %v1654_v37  ;;  %1459 = vmatpush3.bf16.msra.mxu0 %v1458_v12  ;;  %v816_v12 = vld [vmem:[#allocation8 + $0xf8] sm:$0xff] }
 0x18a   :  { %1461 = vmatprep.subr.bf16.mxu0 %v1460_v14  ;;  %v1484_v13 = vpack.c.bf16 %v816_v12, %v815_v11 }
 0x18c   :  { %1493 = vmatpush3.bf16.msra.mxu1 %v1492_v17  ;;  %v1486_v17 = vpack.c.bf16 %v800_v16, %v799_v15 }
 0x18d   :  { %1494 = vmatprep.subr.bf16.mxu1 %v1654_v37  ;;  %1463 = vmatpush3.bf16.msra.mxu0 %v1462_v24 }
 0x18e   :  { %1465 = vmatprep.subr.bf16.mxu0 %v1464_v26 }
 0x190   :  { %1496 = vmatpush3.bf16.msra.mxu1 %v1495_v29 }
 0x191   :  { %1497 = vmatprep.subr.bf16.mxu1 %v1654_v37  ;;  %1467 = vmatpush3.bf16.msra.mxu0 %v1466_v34 }
 0x192   :  { %1469 = vmatprep.subr.bf16.mxu0 %v1468_v35 }
 0x194   :  { %1499 = vmatpush3.bf16.msra.mxu1 %v1498_v40 }
 0x195   :  { %1500 = vmatprep.subr.bf16.mxu1 %v1654_v37  ;;  %1471 = vmatpush3.bf16.msra.mxu0 %v1470_v50 }
 0x196   :  { %1473 = vmatprep.subr.bf16.mxu0 %v1472_v51 }
 0x198   :  { %1502 = vmatpush3.bf16.msra.mxu1 %v1501_v54 }
 0x199   :  { %1503 = vmatprep.subr.bf16.mxu1 %v1654_v37  ;;  %1475 = vmatpush3.bf16.msra.mxu0 %v1474_v59 }
 0x19a   :  { %1477 = vmatprep.subr.bf16.mxu0 %v1476_v60 }
 0x19c   :  { %1505 = vmatpush3.bf16.msra.mxu1 %v1504_v63 }
 0x19d   :  { %1506 = vmatprep.subr.bf16.mxu1 %v1654_v37  ;;  %1479 = vmatpush3.bf16.msra.mxu0 %v1478_v4 }
 0x19e   :  { %1481 = vmatprep.subr.bf16.mxu0 %v1480_v44 }
 0x1a0   :  { %1508 = vmatpush3.bf16.msra.mxu1 %v1507_v5 }
 0x1a1   :  { %1509 = vmatprep.subr.bf16.mxu1 %v1654_v37  ;;  %1483 = vmatpush3.bf16.msra.mxu0 %v1482_v7  ;;  %v483_v37 = vld [vmem:[%s1823_s4] sm:$0x7] }
 0x1a2   :  { %1485 = vmatprep.subr.bf16.mxu0 %v1484_v13  ;;  %v496_v14 = vrot.slane %v483_v37, %v190_v48  ;;  %v488_v21 = vrot.slane %v483_v37, %v182_v43  ;;  %v492_v22 = vrot.slane %v483_v37, %v186_v45 }
 0x1a4   :  { %1511 = vmatpush3.bf16.msra.mxu1 %v1510_v10 }
 0x1a5   :  { %1487 = vmatpush3.bf16.msra.mxu0 %v1486_v17 }
 0x23a   :  { %v1066_v18 = vpop.f32.mrb[2].mxu0 }
 0x23b   :  { %v1067_v19 = vpop.f32.mrb[3].mxu0 }
 0x23c   :  { %v1068_v20 = vadd.f32 %v1067_v19, %v1066_v18 }
 0x23e   :  { %v709_v23 = vadd.f32 %v1068_v20, %v496_v14 }
 0x25a   :  { %v637_v24 = vpop.f32.mrb[2].mxu1  ;;  %v778_v25 = vpop.f32.mrb[4].mxu0 }
 0x25b   :  { %v1512_v26 = vadd.f32 %v637_v24, %v488_v21  ;;  %v779_v27 = vadd.f32 %v778_v25, %v709_v23  ;;  %v639_v28 = vpop.f32.mrb[3].mxu1  ;;  %v1172_v29 = vpop.f32.mrb[5].mxu0 }
 0x25c   :  { %v1513_v30 = vadd.f32 %v639_v28, %v492_v22 }
 0x25d   :  { %v784_v31 = vmax.f32 %v779_v27, 0.0  ;;  %v782_v33 = vmax.f32 %v1512_v26, 0.0 }
 0x25e   :  { %v783_v32 = vmax.f32 %v1513_v30, 0.0 }
 0x25f   :  { %1206 = vmatmul.mubr.f32.vlgmr.msra.gmra.mrb[4].mxu1 %v784_v31 }
 0x260   :  { %904 = vmatprep.mubr.f32.mxu0 %v783_v32 }
 0x261   :  { %905 = vmatmul.mubr.f32.vlgmr.msra.gmra.mrb[6].mxu0 %v782_v33 }
 0x332   :  { %v976_v48 = vpop.f32.mrb[4].mxu1 }
 0x333   :  { %v1207_v34 = vpop.f32.mrb[5].mxu1 }
 0x334   :  { %v1118_v43 = vpop.f32.mrb[6].mxu0 }
 0x335   :  { %v1119_v45 = vpop.f32.mrb[7].mxu0 }
 0x336   :  { %v1120_v35 = vadd.f32 %v1119_v45, %v1118_v43 }
 0x338   :  { %v907_v36 = vadd.f32 %v1120_v35, %v998_v39 }
 0x33a   :  { %v977_v38 = vadd.f32 %v976_v48, %v907_v36 }
 0x33c   :  { %980 = vst [vmem:[#allocation10] sm:$0xff] %v977_v38 }
 0x33d   :  { %1627 = shalt.err (!%p1624_p8)
}
 0x33e   :  { %s1628_s13 = scalar_lea.hbm %s1826_s7, 128 }
 0x33f   :  { %p1629_p9 = scmp.ne.s32.totalorder %s1826_s7, %s1628_s13  ;;  %p1632_p10 = scmp.lt.u32.totalorder %s1628_s13, %s1826_s7 }
 0x341   :  { %p1634_p11 = pnand %p1632_p10, %p1629_p9 }
 0x343   :  { %1637 = shalt.err (!%p1634_p11)
}
 0x344   :  { %990 = dma.vmem_to_hbm [thread:$0]  %s988_s30, 128, %s1826_s7, [#allocation4]  }
 0x345   :  { %1644 = dma.done.wait [#allocation4], 128  }
 0x346   :  { %1645 = vsyncadd [#allocation4], 4294967168 }
 0x347   :  { %994 = vsyncpa [#allocation3], 1 }
 0x348   :  { %995 = vsyncpa [#allocation6], 1 }
 0x349   :  { %996 = vsyncpa [#allocation9], 1 }
 0x34a   :  { %997 = vsyncpa [#allocation4], 1 }

// kernel: tpu_custom_call.1
= control target key start
LH: loop header
LB: loop body
LE: loop exit
PB: predicated region body
PF: predicated region fallthrough
CT: control target
= control target key end

     0   :  { %12 = vsyncpa [#allocation3], 0  ;;  %s1819_s0 = inlined_call_operand.hbm [shape: f32[8,256], index: 0, kind: input, shape index: {}]   ;;  %s1820_s1 = inlined_call_operand.hbm [shape: f32[256,384], index: 1, kind: input, shape index: {}]   ;;  %s1821_s2 = inlined_call_operand.vmem [shape: f32[1,384], index: 2, kind: input, shape index: {}]   ;;  %s1822_s3 = inlined_call_operand.hbm [shape: f32[384,384], index: 3, kind: input, shape index: {}]   ;;  %s1823_s4 = inlined_call_operand.vmem [shape: f32[1,384], index: 4, kind: input, shape index: {}]   ;;  %s1824_s5 = inlined_call_operand.hbm [shape: f32[384,128], index: 5, kind: input, shape index: {}]   ;;  %s1825_s6 = inlined_call_operand.vmem [shape: f32[1,128], index: 6, kind: input, shape index: {}]   ;;  %s1826_s7 = inlined_call_operand.hbm [shape: f32[8,128], index: 7, kind: output, shape index: {}]  }
   0x1   :  { %13 = vsyncpa [#allocation6], 0 }
   0x2   :  { %14 = vsyncpa [#allocation9], 0 }
   0x3   :  { %15 = vsyncpa [#allocation4], 0  ;;  %s1646_s24 = smov [#allocation5]   ;;  %s1528_s28 = scalar_lea.hbm %s1820_s1, 12288 }
   0x4   :  { %s31_s25 = sshll.u32 %s1646_s24, 4  ;;  %p1529_p0 = scmp.ne.s32.totalorder %s1820_s1, %s1528_s28  ;;  %s32_s25 = int_to_ptr.vmem [resolvable:$true] %s31_s25 }
   0x5   :  { %p1532_p1 = scmp.lt.u32.totalorder %s1528_s28, %s1820_s1 }
   0x7   :  { %p1534_p2 = pnand %p1532_p1, %p1529_p0 }
   0x9   :  { %1537 = shalt.err (!%p1534_p2)
}
   0xa   :  { %s1538_s10 = scalar_lea.vmem %s32_s25, 12288  ;;  %p1543_p4 = scmp.lt.s32.totalorder %s32_s25, %s32_s25 }
   0xb   :  { %p1539_p3 = scmp.ne.s32.totalorder %s32_s25, %s1538_s10  ;;  %p1544_p5 = scmp.lt.s32.totalorder %s1538_s10, %s1538_s10 }
   0xd   :  { %p1545_p6 = por %p1544_p5, %p1543_p4 }
   0xf   :  { %p1546_p7 = pnand %p1545_p6, %p1539_p3 }
  0x11   :  { %1549 = shalt.err (!%p1546_p7)
}
  0x12   :  { %s1647_s11 = smov 384   ;;  %s1648_s12 = smov 24  }
  0x13   :  { %37 = dma.hbm_to_vmem [thread:$0]  %s1820_s1, 12288, %s32_s25, [#allocation6], %s1647_s11, %s1647_s11, %s1648_s12  }
  0x14   :  { %s1649_s15 = smov [#allocation2]   ;;  %s1650_s17 = smov [#allocation7]  }
  0x15   :  { %s22_s16 = sshll.u32 %s1649_s15, 4  ;;  %s45_s18 = sshll.u32 %s1650_s17, 4  ;;  %s23_s16 = int_to_ptr.vmem [resolvable:$true] %s22_s16  ;;  %s46_s18 = int_to_ptr.vmem [resolvable:$true] %s45_s18 }
  0x16   :  { %s1550_s21 = scalar_lea.hbm %s1819_s0, 256 }
  0x17   :  { %p1551_p8 = scmp.ne.s32.totalorder %s1819_s0, %s1550_s21  ;;  %p1554_p9 = scmp.lt.u32.totalorder %s1550_s21, %s1819_s0 }
  0x19   :  { %p1556_p10 = pnand %p1554_p9, %p1551_p8 }
  0x1b   :  { %1559 = shalt.err (!%p1556_p10)
}
  0x1c   :  { %s1560_s1 = scalar_lea.vmem %s23_s16, 256  ;;  %p1565_p12 = scmp.lt.s32.totalorder %s23_s16, %s23_s16 }
  0x1d   :  { %p1561_p11 = scmp.ne.s32.totalorder %s23_s16, %s1560_s1  ;;  %p1566_p13 = scmp.lt.s32.totalorder %s1560_s1, %s1560_s1 }
  0x1f   :  { %p1567_p0 = por %p1566_p13, %p1565_p12 }
  0x21   :  { %p1568_p1 = pnand %p1567_p0, %p1561_p11 }
  0x23   :  { %1571 = shalt.err (!%p1568_p1)
}
  0x24   :  { %25 = dma.hbm_to_vmem [thread:$0]  %s1819_s0, 256, %s23_s16, [#allocation3]  }
  0x25   :  { %s1572_s30 = scalar_lea.hbm %s1822_s3, 18432 }
  0x26   :  { %p1573_p2 = scmp.ne.s32.totalorder %s1822_s3, %s1572_s30  ;;  %p1576_p3 = scmp.lt.u32.totalorder %s1572_s30, %s1822_s3 }
  0x28   :  { %p1578_p4 = pnand %p1576_p3, %p1573_p2 }
  0x2a   :  { %1581 = shalt.err (!%p1578_p4)
}
  0x2b   :  { %s1582_s14 = scalar_lea.vmem %s46_s18, 18432  ;;  %p1587_p6 = scmp.lt.s32.totalorder %s46_s18, %s46_s18 }
  0x2c   :  { %p1583_p5 = scmp.ne.s32.totalorder %s46_s18, %s1582_s14  ;;  %p1588_p7 = scmp.lt.s32.totalorder %s1582_s14, %s1582_s14 }
  0x2e   :  { %p1589_p8 = por %p1588_p7, %p1587_p6 }
  0x30   :  { %p1590_p9 = pnand %p1589_p8, %p1583_p5 }
  0x32   :  { %1593 = shalt.err (!%p1590_p9)
}
  0x33   :  { %51 = dma.hbm_to_vmem [thread:$0]  %s1822_s3, 18432, %s46_s18, [#allocation6], %s1647_s11, %s1647_s11, %s1648_s12  }
  0x34   :  { %s1651_s16 = smov [#allocation8]   ;;  %s1594_s21 = scalar_lea.hbm %s1824_s5, 6144 }
  0x35   :  { %s59_s17 = sshll.u32 %s1651_s16, 4  ;;  %p1595_p10 = scmp.ne.s32.totalorder %s1824_s5, %s1594_s21  ;;  %s60_s17 = int_to_ptr.vmem [resolvable:$true] %s59_s17 }
  0x36   :  { %p1598_p11 = scmp.lt.u32.totalorder %s1594_s21, %s1824_s5 }
  0x38   :  { %p1600_p12 = pnand %p1598_p11, %p1595_p10 }
  0x3a   :  { %1603 = shalt.err (!%p1600_p12)
}
  0x3b   :  { %s1604_s1 = scalar_lea.vmem %s60_s17, 6144  ;;  %p1609_p0 = scmp.lt.s32.totalorder %s60_s17, %s60_s17 }
  0x3c   :  { %p1605_p13 = scmp.ne.s32.totalorder %s60_s17, %s1604_s1  ;;  %p1610_p1 = scmp.lt.s32.totalorder %s1604_s1, %s1604_s1 }
  0x3e   :  { %p1611_p2 = por %p1610_p1, %p1609_p0 }
  0x40   :  { %p1612_p3 = pnand %p1611_p2, %p1605_p13 }
  0x42   :  { %1615 = shalt.err (!%p1612_p3)
}
  0x43   :  { %s1652_s3 = smov 128   ;;  %s1653_s11 = smov 8  }
  0x44   :  { %65 = dma.hbm_to_vmem [thread:$0]  %s1824_s5, 6144, %s60_s17, [#allocation9], %s1652_s3, %s1652_s3, %s1653_s11  }
  0x45   :  { %1638 = dma.done.wait [#allocation3], 256  }
  0x46   :  { %1639 = vsyncadd [#allocation3], 4294967040 }
  0x47   :  { %1640 = dma.done.wait [#allocation6], 30720  }
  0x48   :  { %1641 = vsyncadd [#allocation6], 4294936576 }
  0x49   :  { %1642 = dma.done.wait [#allocation9], 6144  }
  0x4a   :  { %1643 = vsyncadd [#allocation9], 4294961152  ;;  %v83_v0 = vld [vmem:[#allocation5 + $0x8] sm:$0xff]  ;;  %v86_v1 = vld [vmem:[#allocation5 + $0x20] sm:$0xff]  ;;  %vm1656_vm0 = vmmov 0   ;;  %s1657_s29 = smov [#allocation10]  }
  0x4b   :  { %v82_v2 = vld [vmem:[#allocation5] sm:$0xff]  ;;  %v1208_v3 = vpack.c.bf16 %v86_v1, %v83_v0  ;;  %v85_v4 = vld [vmem:[#allocation5 + $0x18] sm:$0xff]  ;;  %v92_v6 = vld [vmem:[#allocation5 + $0x50] sm:$0xff]  ;;  %s987_s30 = sshll.u32 %s1657_s29, 4  ;;  %s988_s30 = int_to_ptr.vmem [resolvable:$true] %s987_s30 }
  0x4c   :  { %v89_v5 = vld [vmem:[#allocation5 + $0x38] sm:$0xff]  ;;  %v1210_v7 = vpack.c.bf16 %v85_v4, %v82_v2  ;;  %v88_v9 = vld [vmem:[#allocation5 + $0x30] sm:$0xff]  ;;  %v91_v10 = vld [vmem:[#allocation5 + $0x48] sm:$0xff]  ;;  %s1616_s8 = scalar_lea.vmem %s988_s30, 128  ;;  %p1621_p5 = scmp.lt.s32.totalorder %s988_s30, %s988_s30 }
  0x4d   :  { %v1212_v8 = vpack.c.bf16 %v92_v6, %v89_v5  ;;  %v95_v11 = vld [vmem:[#allocation5 + $0x68] sm:$0xff]  ;;  %1209 = vmatprep.subr.bf16.mxu0 %v1208_v3  ;;  %v98_v12 = vld [vmem:[#allocation5 + $0x80] sm:$0xff]  ;;  %v1214_v13 = vpack.c.bf16 %v91_v10, %v88_v9  ;;  %v97_v16 = vld [vmem:[#allocation5 + $0x78] sm:$0xff]  ;;  %p1617_p4 = scmp.ne.s32.totalorder %s988_s30, %s1616_s8  ;;  %p1622_p6 = scmp.lt.s32.totalorder %s1616_s8, %s1616_s8 }
  0x4e   :  { %1211 = vmatpush1.bf16.msra.mxu0 %v1210_v7  ;;  %v1216_v14 = vpack.c.bf16 %v98_v12, %v95_v11  ;;  %v94_v15 = vld [vmem:[#allocation5 + $0x60] sm:$0xff]  ;;  %v101_v17 = vld [vmem:[#allocation5 + $0x98] sm:$0xff]  ;;  %v104_v18 = vld [vmem:[#allocation5 + $0xb0] sm:$0xff] }
  0x4f   :  { %1213 = vmatprep.subr.bf16.mxu0 %v1212_v8  ;;  %v1218_v19 = vpack.c.bf16 %v97_v16, %v94_v15  ;;  %v1220_v20 = vpack.c.bf16 %v104_v18, %v101_v17  ;;  %v100_v21 = vld [vmem:[#allocation5 + $0x90] sm:$0xff]  ;;  %v103_v22 = vld [vmem:[#allocation5 + $0xa8] sm:$0xff]  ;;  %v110_v24 = vld [vmem:[#allocation5 + $0xe0] sm:$0xff]  ;;  %p1623_p7 = por %p1622_p6, %p1621_p5 }
  0x50   :  { %v107_v23 = vld [vmem:[#allocation5 + $0xc8] sm:$0xff]  ;;  %v1222_v25 = vpack.c.bf16 %v103_v22, %v100_v21  ;;  %v106_v27 = vld [vmem:[#allocation5 + $0xc0] sm:$0xff]  ;;  %v109_v28 = vld [vmem:[#allocation5 + $0xd8] sm:$0xff] }
  0x51   :  { %v1224_v26 = vpack.c.bf16 %v110_v24, %v107_v23  ;;  %v113_v29 = vld [vmem:[#allocation5 + $0xf8] sm:$0xff]  ;;  %v116_v30 = vld [vmem:[#allocation5 + $0x110] sm:$0xff]  ;;  %v1226_v31 = vpack.c.bf16 %v109_v28, %v106_v27  ;;  %v115_v34 = vld [vmem:[#allocation5 + $0x108] sm:$0xff]  ;;  %p1624_p8 = pnand %p1623_p7, %p1617_p4 }
  0x52   :  { %1215 = vmatpush1.bf16.msra.mxu0 %v1214_v13  ;;  %v1228_v32 = vpack.c.bf16 %v116_v30, %v113_v29  ;;  %v112_v33 = vld [vmem:[#allocation5 + $0xf0] sm:$0xff]  ;;  %v119_v35 = vld [vmem:[#allocation5 + $0x128] sm:$0xff]  ;;  %v122_v36 = vld [vmem:[#allocation5 + $0x140] sm:$0xff] }
  0x53   :  { %1217 = vmatprep.subr.bf16.mxu0 %v1216_v14  ;;  %v1230_v37 = vpack.c.bf16 %v115_v34, %v112_v33  ;;  %v118_v38 = vld [vmem:[#allocation5 + $0x120] sm:$0xff]  ;;  %v121_v39 = vld [vmem:[#allocation5 + $0x138] sm:$0xff]  ;;  %v1232_v41 = vpack.c.bf16 %v122_v36, %v119_v35  ;;  %v128_v42 = vld [vmem:[#allocation5 + $0x170] sm:$0xff] }
  0x54   :  { %v125_v40 = vld [vmem:[#allocation5 + $0x158] sm:$0xff]  ;;  %v132_v43 = vld [vmem:[#allocation5 + $0x190] sm:$0xff]  ;;  %v135_v44 = vld [vmem:[#allocation5 + $0x1a8] sm:$0xff]  ;;  %v1234_v53 = vpack.c.bf16 %v121_v39, %v118_v38 }
  0x55   :  { %v1272_v45 = vpack.c.bf16 %v135_v44, %v132_v43  ;;  %v84_v46 = vld [vmem:[#allocation5 + $0x10] sm:$0xff]  ;;  %v87_v47 = vld [vmem:[#allocation5 + $0x28] sm:$0xff]  ;;  %v81_v48 = vld [vmem:[#allocation2 + $0x8] sm:$0xff]  ;;  %v1236_v58 = vpack.c.bf16 %v128_v42, %v125_v40 }
  0x56   :  { %1219 = vmatpush1.bf16.msra.mxu0 %v1218_v19  ;;  %v124_v49 = vld [vmem:[#allocation5 + $0x150] sm:$0xff]  ;;  %v1274_v50 = vpack.c.bf16 %v87_v47, %v84_v46  ;;  %259 = vmatprep.mubr.f32.mxu0 %v81_v48  ;;  %v138_v51 = vld [vmem:[#allocation5 + $0x1c0] sm:$0xff]  ;;  %v141_v52 = vld [vmem:[#allocation5 + $0x1d8] sm:$0xff] }
  0x57   :  { %1221 = vmatprep.subr.bf16.mxu0 %v1220_v20  ;;  %330 = vmatprep.mubr.f32.mxu1 %v81_v48  ;;  %v1276_v54 = vpack.c.bf16 %v141_v52, %v138_v51  ;;  %v90_v55 = vld [vmem:[#allocation5 + $0x40] sm:$0xff]  ;;  %v93_v56 = vld [vmem:[#allocation5 + $0x58] sm:$0xff]  ;;  %v144_v57 = vld [vmem:[#allocation5 + $0x1f0] sm:$0xff] }
  0x58   :  { %1273 = vmatprep.subr.bf16.mxu1 %v1272_v45  ;;  %v127_v59 = vld [vmem:[#allocation5 + $0x168] sm:$0xff]  ;;  %v1278_v61 = vpack.c.bf16 %v93_v56, %v90_v55  ;;  %v134_v63 = vld [vmem:[#allocation5 + $0x1a0] sm:$0xff]  ;;  %v96_v1 = vld [vmem:[#allocation5 + $0x70] sm:$0xff] }
  0x59   :  { %v131_v60 = vld [vmem:[#allocation5 + $0x188] sm:$0xff]  ;;  %1275 = vmatpush3.bf16.msra.mxu1 %v1274_v50  ;;  %v150_v3 = vld [vmem:[#allocation5 + $0x220] sm:$0xff]  ;;  %v153_v4 = vld [vmem:[#allocation5 + $0x238] sm:$0xff]  ;;  %v1238_v5 = vpack.c.bf16 %v127_v59, %v124_v49 }
  0x5a   :  { %1223 = vmatpush1.bf16.msra.mxu0 %v1222_v25  ;;  %v147_v62 = vld [vmem:[#allocation5 + $0x208] sm:$0xff]  ;;  %1277 = vmatprep.subr.bf16.mxu1 %v1276_v54  ;;  %v1240_v6 = vpack.c.bf16 %v134_v63, %v131_v60  ;;  %v130_v7 = vld [vmem:[#allocation5 + $0x180] sm:$0xff]  ;;  %v133_v8 = vld [vmem:[#allocation5 + $0x198] sm:$0xff]  ;;  %v1284_v12 = vpack.c.bf16 %v153_v4, %v150_v3 }
  0x5b   :  { %1225 = vmatprep.subr.bf16.mxu0 %v1224_v26  ;;  %v1280_v0 = vpack.c.bf16 %v147_v62, %v144_v57  ;;  %v99_v2 = vld [vmem:[#allocation5 + $0x88] sm:$0xff]  ;;  %v137_v9 = vld [vmem:[#allocation5 + $0x1b8] sm:$0xff]  ;;  %v140_v11 = vld [vmem:[#allocation5 + $0x1d0] sm:$0xff]  ;;  %v1242_v17 = vpack.c.bf16 %v133_v8, %v130_v7 }
  0x5c   :  { %v1282_v10 = vpack.c.bf16 %v99_v2, %v96_v1  ;;  %v102_v13 = vld [vmem:[#allocation5 + $0xa0] sm:$0xff]  ;;  %v105_v14 = vld [vmem:[#allocation5 + $0xb8] sm:$0xff]  ;;  %v156_v15 = vld [vmem:[#allocation5 + $0x250] sm:$0xff]  ;;  %v1244_v18 = vpack.c.bf16 %v140_v11, %v137_v9 }
  0x5d   :  { %1279 = vmatpush3.bf16.msra.mxu1 %v1278_v61  ;;  %v159_v16 = vld [vmem:[#allocation5 + $0x268] sm:$0xff]  ;;  %v136_v19 = vld [vmem:[#allocation5 + $0x1b0] sm:$0xff]  ;;  %v1286_v22 = vpack.c.bf16 %v105_v14, %v102_v13  ;;  %v146_v23 = vld [vmem:[#allocation5 + $0x200] sm:$0xff] }
  0x5e   :  { %1227 = vmatpush1.bf16.msra.mxu0 %v1226_v31  ;;  %1281 = vmatprep.subr.bf16.mxu1 %v1280_v0  ;;  %v139_v20 = vld [vmem:[#allocation5 + $0x1c8] sm:$0xff]  ;;  %v1288_v24 = vpack.c.bf16 %v159_v16, %v156_v15  ;;  %v108_v25 = vld [vmem:[#allocation5 + $0xd0] sm:$0xff]  ;;  %v162_v27 = vld [vmem:[#allocation5 + $0x280] sm:$0xff] }
  0x5f   :  { %1229 = vmatprep.subr.bf16.mxu0 %v1228_v32  ;;  %v143_v21 = vld [vmem:[#allocation5 + $0x1e8] sm:$0xff]  ;;  %v165_v28 = vld [vmem:[#allocation5 + $0x298] sm:$0xff]  ;;  %v1246_v29 = vpack.c.bf16 %v139_v20, %v136_v19  ;;  %v142_v31 = vld [vmem:[#allocation5 + $0x1e0] sm:$0xff] }
  0x60   :  { %v111_v26 = vld [vmem:[#allocation5 + $0xe8] sm:$0xff]  ;;  %v1248_v30 = vpack.c.bf16 %v146_v23, %v143_v21  ;;  %v145_v32 = vld [vmem:[#allocation5 + $0x1f8] sm:$0xff]  ;;  %v152_v35 = vld [vmem:[#allocation5 + $0x230] sm:$0xff]  ;;  %v1292_v36 = vpack.c.bf16 %v165_v28, %v162_v27 }
  0x61   :  { %1283 = vmatpush3.bf16.msra.mxu1 %v1282_v10  ;;  %v149_v33 = vld [vmem:[#allocation5 + $0x218] sm:$0xff]  ;;  %v1290_v34 = vpack.c.bf16 %v111_v26, %v108_v25  ;;  %v168_v39 = vld [vmem:[#allocation5 + $0x2b0] sm:$0xff]  ;;  %v171_v40 = vld [vmem:[#allocation5 + $0x2c8] sm:$0xff] }
  0x62   :  { %1231 = vmatpush1.bf16.msra.mxu0 %v1230_v37  ;;  %1285 = vmatprep.subr.bf16.mxu1 %v1284_v12  ;;  %v114_v37 = vld [vmem:[#allocation5 + $0x100] sm:$0xff]  ;;  %v117_v38 = vld [vmem:[#allocation5 + $0x118] sm:$0xff]  ;;  %v1252_v42 = vpack.c.bf16 %v152_v35, %v149_v33  ;;  %v148_v43 = vld [vmem:[#allocation5 + $0x210] sm:$0xff]  ;;  %v1296_v48 = vpack.c.bf16 %v171_v40, %v168_v39 }
  0x63   :  { %1233 = vmatprep.subr.bf16.mxu0 %v1232_v41  ;;  %v1250_v41 = vpack.c.bf16 %v145_v32, %v142_v31  ;;  %v151_v44 = vld [vmem:[#allocation5 + $0x228] sm:$0xff]  ;;  %v1294_v46 = vpack.c.bf16 %v117_v38, %v114_v37  ;;  %v158_v47 = vld [vmem:[#allocation5 + $0x260] sm:$0xff]  ;;  %v120_v49 = vld [vmem:[#allocation5 + $0x130] sm:$0xff] }
  0x64   :  { %v155_v45 = vld [vmem:[#allocation5 + $0x248] sm:$0xff]  ;;  %v174_v51 = vld [vmem:[#allocation5 + $0x2e0] sm:$0xff]  ;;  %v177_v52 = vld [vmem:[#allocation5 + $0x2f8] sm:$0xff] }
  0x65   :  { %1287 = vmatpush3.bf16.msra.mxu1 %v1286_v22  ;;  %v123_v50 = vld [vmem:[#allocation5 + $0x148] sm:$0xff]  ;;  %v1256_v54 = vpack.c.bf16 %v158_v47, %v155_v45  ;;  %v154_v55 = vld [vmem:[#allocation5 + $0x240] sm:$0xff]  ;;  %v157_v56 = vld [vmem:[#allocation5 + $0x258] sm:$0xff]  ;;  %v1300_v60 = vpack.c.bf16 %v177_v52, %v174_v51 }
  0x66   :  { %1235 = vmatpush1.bf16.msra.mxu0 %v1234_v53  ;;  %1289 = vmatprep.subr.bf16.mxu1 %v1288_v24  ;;  %v1254_v53 = vpack.c.bf16 %v151_v44, %v148_v43  ;;  %v161_v57 = vld [vmem:[#allocation5 + $0x278] sm:$0xff]  ;;  %v164_v59 = vld [vmem:[#allocation5 + $0x290] sm:$0xff]  ;;  %v126_v61 = vld [vmem:[#allocation5 + $0x160] sm:$0xff]  ;;  %v1258_v1 = vpack.c.bf16 %v157_v56, %v154_v55 }
  0x67   :  { %1237 = vmatprep.subr.bf16.mxu0 %v1236_v58  ;;  %v1298_v58 = vpack.c.bf16 %v123_v50, %v120_v49  ;;  %v129_v62 = vld [vmem:[#allocation5 + $0x178] sm:$0xff]  ;;  %v340_v63 = vld [vmem:[#allocation7 + $0x8] sm:$0xff]  ;;  %v343_v0 = vld [vmem:[#allocation7 + $0x20] sm:$0xff]  ;;  %v1260_v2 = vpack.c.bf16 %v164_v59, %v161_v57 }
  0x68   :  { %v160_v3 = vld [vmem:[#allocation5 + $0x270] sm:$0xff]  ;;  %v163_v4 = vld [vmem:[#allocation5 + $0x288] sm:$0xff]  ;;  %v170_v7 = vld [vmem:[#allocation5 + $0x2c0] sm:$0xff]  ;;  %v1304_v8 = vpack.c.bf16 %v343_v0, %v340_v63 }
  0x69   :  { %1291 = vmatpush3.bf16.msra.mxu1 %v1290_v34  ;;  %v339_v9 = vld [vmem:[#allocation7] sm:$0xff]  ;;  %v342_v10 = vld [vmem:[#allocation7 + $0x18] sm:$0xff]  ;;  %v349_v12 = vld [vmem:[#allocation7 + $0x50] sm:$0xff]  ;;  %v1262_v13 = vpack.c.bf16 %v163_v4, %v160_v3 }
  0x6a   :  { %1239 = vmatpush1.bf16.msra.mxu0 %v1238_v5  ;;  %1293 = vmatprep.subr.bf16.mxu1 %v1292_v36  ;;  %v167_v5 = vld [vmem:[#allocation5 + $0x2a8] sm:$0xff]  ;;  %v346_v11 = vld [vmem:[#allocation7 + $0x38] sm:$0xff]  ;;  %v166_v15 = vld [vmem:[#allocation5 + $0x2a0] sm:$0xff] }
  0x6b   :  { %1241 = vmatprep.subr.bf16.mxu0 %v1240_v6  ;;  %v1302_v6 = vpack.c.bf16 %v129_v62, %v126_v61  ;;  %v1264_v14 = vpack.c.bf16 %v170_v7, %v167_v5  ;;  %v169_v16 = vld [vmem:[#allocation5 + $0x2b8] sm:$0xff]  ;;  %v176_v19 = vld [vmem:[#allocation5 + $0x2f0] sm:$0xff]  ;;  %v1308_v20 = vpack.c.bf16 %v349_v12, %v346_v11  ;;  %v348_v22 = vld [vmem:[#allocation7 + $0x48] sm:$0xff] }
  0x6c   :  { %v345_v21 = vld [vmem:[#allocation7 + $0x30] sm:$0xff]  ;;  %v352_v24 = vld [vmem:[#allocation7 + $0x68] sm:$0xff]  ;;  %v355_v25 = vld [vmem:[#allocation7 + $0x80] sm:$0xff]  ;;  %v1266_v26 = vpack.c.bf16 %v169_v16, %v166_v15 }
  0x6d   :  { %1295 = vmatpush3.bf16.msra.mxu1 %v1294_v46  ;;  %v80_v23 = vld [vmem:[#allocation2] sm:$0xff]  ;;  %v351_v31 = vld [vmem:[#allocation7 + $0x60] sm:$0xff]  ;;  %v1312_v32 = vpack.c.bf16 %v355_v25, %v352_v24  ;;  %v354_v33 = vld [vmem:[#allocation7 + $0x78] sm:$0xff] }
  0x6e   :  { %1243 = vmatpush1.bf16.msra.mxu0 %v1242_v17  ;;  %1297 = vmatprep.subr.bf16.mxu1 %v1296_v48  ;;  %v173_v17 = vld [vmem:[#allocation5 + $0x2d8] sm:$0xff]  ;;  %v172_v28 = vld [vmem:[#allocation5 + $0x2d0] sm:$0xff]  ;;  %v392_v35 = vld [vmem:[#allocation7 + $0x1a8] sm:$0xff]  ;;  %v1314_v39 = vpack.c.bf16 %v354_v33, %v351_v31 }
  0x6f   :  { %1245 = vmatprep.subr.bf16.mxu0 %v1244_v18  ;;  %v1306_v18 = vpack.c.bf16 %v342_v10, %v339_v9  ;;  %v1268_v27 = vpack.c.bf16 %v176_v19, %v173_v17  ;;  %v389_v34 = vld [vmem:[#allocation7 + $0x190] sm:$0xff]  ;;  %v358_v36 = vld [vmem:[#allocation7 + $0x98] sm:$0xff]  ;;  %v344_v43 = vld [vmem:[#allocation7 + $0x28] sm:$0xff] }
  0x70   :  { %v361_v37 = vld [vmem:[#allocation7 + $0xb0] sm:$0xff]  ;;  %v360_v45 = vld [vmem:[#allocation7 + $0xa8] sm:$0xff]  ;;  %v395_v46 = vld [vmem:[#allocation7 + $0x1c0] sm:$0xff] }
  0x71   :  { %1299 = vmatpush3.bf16.msra.mxu1 %v1298_v58  ;;  %v357_v40 = vld [vmem:[#allocation7 + $0x90] sm:$0xff]  ;;  %v1316_v44 = vpack.c.bf16 %v361_v37, %v358_v36  ;;  %v398_v47 = vld [vmem:[#allocation7 + $0x1d8] sm:$0xff]  ;;  %v364_v48 = vld [vmem:[#allocation7 + $0xc8] sm:$0xff] }
  0x72   :  { %1247 = vmatpush1.bf16.msra.mxu0 %v1246_v29  ;;  %1301 = vmatprep.subr.bf16.mxu1 %v1300_v60  ;;  %v175_v29 = vld [vmem:[#allocation5 + $0x2e8] sm:$0xff]  ;;  %v367_v49 = vld [vmem:[#allocation7 + $0xe0] sm:$0xff]  ;;  %v1318_v51 = vpack.c.bf16 %v360_v45, %v357_v40  ;;  %v350_v55 = vld [vmem:[#allocation7 + $0x58] sm:$0xff] }
  0x73   :  { %1249 = vmatprep.subr.bf16.mxu0 %v1248_v30  ;;  %v1310_v30 = vpack.c.bf16 %v348_v22, %v345_v21  ;;  %v1270_v38 = vpack.c.bf16 %v175_v29, %v172_v28  ;;  %v363_v52 = vld [vmem:[#allocation7 + $0xc0] sm:$0xff]  ;;  %v1320_v56 = vpack.c.bf16 %v367_v49, %v364_v48  ;;  %v366_v57 = vld [vmem:[#allocation7 + $0xd8] sm:$0xff]  ;;  %v401_v58 = vld [vmem:[#allocation7 + $0x1f0] sm:$0xff] }
  0x74   :  { %v404_v59 = vld [vmem:[#allocation7 + $0x208] sm:$0xff]  ;;  %v370_v60 = vld [vmem:[#allocation7 + $0xf8] sm:$0xff]  ;;  %v373_v61 = vld [vmem:[#allocation7 + $0x110] sm:$0xff]  ;;  %v1322_v63 = vpack.c.bf16 %v366_v57, %v363_v52 }
  0x75   :  { %1303 = vmatpush3.bf16.msra.mxu1 %v1302_v6  ;;  %v369_v0 = vld [vmem:[#allocation7 + $0xf0] sm:$0xff]  ;;  %v356_v3 = vld [vmem:[#allocation7 + $0x88] sm:$0xff]  ;;  %v1324_v4 = vpack.c.bf16 %v373_v61, %v370_v60  ;;  %v407_v6 = vld [vmem:[#allocation7 + $0x220] sm:$0xff] }
  0x76   :  { %1251 = vmatpush1.bf16.msra.mxu0 %v1250_v41  ;;  %1305 = vmatprep.subr.bf16.mxu1 %v1304_v8  ;;  %v1400_v41 = vpack.c.bf16 %v392_v35, %v389_v34  ;;  %v372_v5 = vld [vmem:[#allocation7 + $0x108] sm:$0xff]  ;;  %v410_v7 = vld [vmem:[#allocation7 + $0x238] sm:$0xff]  ;;  %v379_v9 = vld [vmem:[#allocation7 + $0x140] sm:$0xff] }
  0x77   :  { %1253 = vmatprep.subr.bf16.mxu0 %v1252_v42  ;;  %v341_v42 = vld [vmem:[#allocation7 + $0x10] sm:$0xff]  ;;  %v376_v8 = vld [vmem:[#allocation7 + $0x128] sm:$0xff]  ;;  %v1326_v11 = vpack.c.bf16 %v372_v5, %v369_v0  ;;  %v375_v12 = vld [vmem:[#allocation7 + $0x120] sm:$0xff] }
  0x78   :  { %331 = vmatmul.mubr.f32.vlgmr.msra.gmra.mrb[0].mxu1 %v80_v23  ;;  %v1402_v50 = vpack.c.bf16 %v344_v43, %v341_v42  ;;  %v362_v15 = vld [vmem:[#allocation7 + $0xb8] sm:$0xff]  ;;  %v1328_v16 = vpack.c.bf16 %v379_v9, %v376_v8  ;;  %v416_v19 = vld [vmem:[#allocation7 + $0x268] sm:$0xff]  ;;  %v385_v21 = vld [vmem:[#allocation7 + $0x170] sm:$0xff] }
  0x79   :  { %1307 = vmatpush1.bf16.msra.mxu1 %v1306_v18  ;;  %v378_v17 = vld [vmem:[#allocation7 + $0x138] sm:$0xff]  ;;  %v413_v18 = vld [vmem:[#allocation7 + $0x250] sm:$0xff]  ;;  %v384_v29 = vld [vmem:[#allocation7 + $0x168] sm:$0xff] }
  0x7a   :  { %1255 = vmatpush1.bf16.msra.mxu0 %v1254_v53  ;;  %1309 = vmatprep.subr.bf16.mxu1 %v1308_v20  ;;  %v1404_v53 = vpack.c.bf16 %v398_v47, %v395_v46  ;;  %v382_v20 = vld [vmem:[#allocation7 + $0x158] sm:$0xff]  ;;  %v381_v24 = vld [vmem:[#allocation7 + $0x150] sm:$0xff]  ;;  %v1416_v25 = vpack.c.bf16 %v416_v19, %v413_v18  ;;  %v391_v33 = vld [vmem:[#allocation7 + $0x1a0] sm:$0xff] }
  0x7b   :  { %1257 = vmatprep.subr.bf16.mxu0 %v1256_v54  ;;  %v347_v54 = vld [vmem:[#allocation7 + $0x40] sm:$0xff]  ;;  %v1332_v28 = vpack.c.bf16 %v385_v21, %v382_v20  ;;  %v422_v31 = vld [vmem:[#allocation7 + $0x298] sm:$0xff]  ;;  %v1334_v35 = vpack.c.bf16 %v384_v29, %v381_v24  ;;  %v425_v42 = vld [vmem:[#allocation7 + $0x2b0] sm:$0xff] }
  0x7c   :  { %v1406_v62 = vpack.c.bf16 %v350_v55, %v347_v54  ;;  %v387_v36 = vld [vmem:[#allocation7 + $0x180] sm:$0xff]  ;;  %v428_v43 = vld [vmem:[#allocation7 + $0x2c8] sm:$0xff]  ;;  %v397_v45 = vld [vmem:[#allocation7 + $0x1d0] sm:$0xff] }
  0x7d   :  { %1311 = vmatpush1.bf16.msra.mxu1 %v1310_v30  ;;  %v419_v30 = vld [vmem:[#allocation7 + $0x280] sm:$0xff]  ;;  %v1424_v48 = vpack.c.bf16 %v428_v43, %v425_v42  ;;  %v377_v49 = vld [vmem:[#allocation7 + $0x130] sm:$0xff]  ;;  %v400_v54 = vld [vmem:[#allocation7 + $0x1e8] sm:$0xff] }
  0x7e   :  { %1259 = vmatpush1.bf16.msra.mxu0 %v1258_v1  ;;  %1313 = vmatprep.subr.bf16.mxu1 %v1312_v32  ;;  %v1408_v1 = vpack.c.bf16 %v404_v59, %v401_v58  ;;  %v388_v32 = vld [vmem:[#allocation7 + $0x188] sm:$0xff]  ;;  %v1420_v37 = vpack.c.bf16 %v422_v31, %v419_v30  ;;  %v393_v52 = vld [vmem:[#allocation7 + $0x1b0] sm:$0xff]  ;;  %v403_v55 = vld [vmem:[#allocation7 + $0x200] sm:$0xff] }
  0x7f   :  { %1261 = vmatprep.subr.bf16.mxu0 %v1260_v2  ;;  %v353_v2 = vld [vmem:[#allocation7 + $0x70] sm:$0xff]  ;;  %v1336_v40 = vpack.c.bf16 %v391_v33, %v388_v32  ;;  %v1344_v58 = vpack.c.bf16 %v403_v55, %v400_v54  ;;  %v399_v59 = vld [vmem:[#allocation7 + $0x1e0] sm:$0xff]  ;;  %v402_v60 = vld [vmem:[#allocation7 + $0x1f8] sm:$0xff] }
  0x80   :  { %v1410_v10 = vpack.c.bf16 %v356_v3, %v353_v2  ;;  %v406_v61 = vld [vmem:[#allocation7 + $0x218] sm:$0xff]  ;;  %v408_v2 = vld [vmem:[#allocation7 + $0x228] sm:$0xff]  ;;  %v423_v19 = vld [vmem:[#allocation7 + $0x2a0] sm:$0xff] }
  0x81   :  { %1315 = vmatpush1.bf16.msra.mxu1 %v1314_v39  ;;  %v374_v39 = vld [vmem:[#allocation7 + $0x118] sm:$0xff]  ;;  %v412_v3 = vld [vmem:[#allocation7 + $0x248] sm:$0xff]  ;;  %v431_v24 = vld [vmem:[#allocation7 + $0x2e0] sm:$0xff] }
  0x82   :  { %1263 = vmatpush1.bf16.msra.mxu0 %v1262_v13  ;;  %1317 = vmatprep.subr.bf16.mxu1 %v1316_v44  ;;  %v1412_v13 = vpack.c.bf16 %v410_v7, %v407_v6  ;;  %v394_v44 = vld [vmem:[#allocation7 + $0x1b8] sm:$0xff]  ;;  %v411_v7 = vld [vmem:[#allocation7 + $0x240] sm:$0xff]  ;;  %v440_v54 = vld [vmem:[#allocation7 + $0x328] sm:$0xff] }
  0x83   :  { %1265 = vmatprep.subr.bf16.mxu0 %v1264_v14  ;;  %v359_v14 = vld [vmem:[#allocation7 + $0xa0] sm:$0xff]  ;;  %v414_v8 = vld [vmem:[#allocation7 + $0x258] sm:$0xff] }
  0x84   :  { %v1414_v22 = vpack.c.bf16 %v362_v15, %v359_v14  ;;  %v418_v9 = vld [vmem:[#allocation7 + $0x278] sm:$0xff]  ;;  %v420_v14 = vld [vmem:[#allocation7 + $0x288] sm:$0xff]  ;;  %v383_v31 = vld [vmem:[#allocation7 + $0x160] sm:$0xff] }
  0x85   :  { %1319 = vmatpush1.bf16.msra.mxu1 %v1318_v51  ;;  %v1340_v51 = vpack.c.bf16 %v397_v45, %v394_v44  ;;  %v424_v15 = vld [vmem:[#allocation7 + $0x2a8] sm:$0xff]  ;;  %v426_v20 = vld [vmem:[#allocation7 + $0x2b8] sm:$0xff]  ;;  %v1761_v44 = vld [vmem:[%s1821_s2] sm:$0x7] }
  0x86   :  { %1267 = vmatpush1.bf16.msra.mxu0 %v1266_v26  ;;  %1321 = vmatprep.subr.bf16.mxu1 %v1320_v56  ;;  %v365_v26 = vld [vmem:[#allocation7 + $0xd0] sm:$0xff]  ;;  %v1362_v21 = vpack.c.bf16 %v426_v20, %v423_v19  ;;  %v386_v32 = vld [vmem:[#allocation7 + $0x178] sm:$0xff]  ;;  %v456_v19 = vld [vmem:[#allocation7 + $0x3a8] sm:$0xff] }
  0x87   :  { %1269 = vmatprep.subr.bf16.mxu0 %v1268_v27  ;;  %v368_v27 = vld [vmem:[#allocation7 + $0xe8] sm:$0xff]  ;;  %v1430_v33 = vpack.c.bf16 %v386_v32, %v383_v31  ;;  %v455_v20 = vld [vmem:[#allocation7 + $0x3a0] sm:$0xff]  ;;  %v466_v31 = vld [vmem:[#allocation7 + $0x3f8] sm:$0xff] }
  0x88   :  { %v1418_v34 = vpack.c.bf16 %v368_v27, %v365_v26  ;;  %v434_v26 = vld [vmem:[#allocation7 + $0x2f8] sm:$0xff]  ;;  %v429_v27 = vld [vmem:[#allocation7 + $0x2d0] sm:$0xff] }
  0x89   :  { %1323 = vmatpush1.bf16.msra.mxu1 %v1322_v63  ;;  %v1346_v63 = vpack.c.bf16 %v402_v60, %v399_v59  ;;  %v1428_v29 = vpack.c.bf16 %v434_v26, %v431_v24  ;;  %v459_v26 = vld [vmem:[#allocation7 + $0x3c0] sm:$0xff]  ;;  %v469_v32 = vld [vmem:[#allocation7 + $0x410] sm:$0xff] }
  0x8a   :  { %1271 = vmatpush1.bf16.msra.mxu0 %v1270_v38  ;;  %1325 = vmatprep.subr.bf16.mxu1 %v1324_v4  ;;  %v371_v38 = vld [vmem:[#allocation7 + $0x100] sm:$0xff] }
  0x8b   :  { %1401 = vmatprep.subr.bf16.mxu0 %v1400_v41  ;;  %v390_v41 = vld [vmem:[#allocation7 + $0x198] sm:$0xff]  ;;  %v1422_v46 = vpack.c.bf16 %v374_v39, %v371_v38  ;;  %v415_v4 = vld [vmem:[#allocation7 + $0x260] sm:$0xff]  ;;  %v180_v38 = vlaneseq }
  0x8c   :  { %v1338_v47 = vpack.c.bf16 %v390_v41, %v387_v36  ;;  %v1352_v6 = vpack.c.bf16 %v415_v4, %v412_v3  ;;  %v448_v3 = vld [vmem:[#allocation7 + $0x368] sm:$0xff]  ;;  %v451_v4 = vld [vmem:[#allocation7 + $0x380] sm:$0xff] }
  0x8d   :  { %260 = vmatmul.mubr.f32.vlgmr.msra.gmra.mrb[0].mxu0 %v80_v23  ;;  %1327 = vmatpush1.bf16.msra.mxu1 %v1326_v11  ;;  %v1330_v23 = vpack.c.bf16 %v378_v17, %v375_v12  ;;  %v1354_v11 = vpack.c.bf16 %v414_v8, %v411_v7  ;;  %v1753_v39 = vshrl.u32 %v180_v38, 7  ;;  %v447_v7 = vld [vmem:[#allocation7 + $0x360] sm:$0xff]  ;;  %v1376_v8 = vpack.c.bf16 %v451_v4, %v448_v3  ;;  %v468_v38 = vld [vmem:[#allocation7 + $0x408] sm:$0xff] }
  0x8e   :  { %1403 = vmatpush3.bf16.msra.mxu0 %v1402_v50  ;;  %1329 = vmatprep.subr.bf16.mxu1 %v1328_v16  ;;  %v380_v50 = vld [vmem:[#allocation7 + $0x148] sm:$0xff]  ;;  %v427_v16 = vld [vmem:[#allocation7 + $0x2c0] sm:$0xff] }
  0x8f   :  { %1405 = vmatprep.subr.bf16.mxu0 %v1404_v53  ;;  %v396_v53 = vld [vmem:[#allocation7 + $0x1c8] sm:$0xff]  ;;  %v1426_v56 = vpack.c.bf16 %v380_v50, %v377_v49  ;;  %v1360_v18 = vpack.c.bf16 %v427_v16, %v424_v15  ;;  %v182_v43 = vsub.s32 0, %v1753_v39  ;;  %v186_v45 = vsub.s32 1, %v1753_v39  ;;  %v435_v49 = vld [vmem:[#allocation7 + $0x300] sm:$0xff] }
  0x90   :  { %v1342_v57 = vpack.c.bf16 %v396_v53, %v393_v52  ;;  %v438_v52 = vld [vmem:[#allocation7 + $0x318] sm:$0xff]  ;;  %v437_v53 = vld [vmem:[#allocation7 + $0x310] sm:$0xff] }
  0x91   :  { %1331 = vmatpush1.bf16.msra.mxu1 %v1330_v23  ;;  %v433_v23 = vld [vmem:[#allocation7 + $0x2f0] sm:$0xff]  ;;  %v1370_v59 = vpack.c.bf16 %v438_v52, %v435_v49  ;;  %v1433_v60 = vpack.c.bf16 %v440_v54, %v437_v53  ;;  %v474_v53 = vld [vmem:[#allocation7 + $0x438] sm:$0xff] }
  0x92   :  { %1407 = vmatpush3.bf16.msra.mxu0 %v1406_v62  ;;  %1333 = vmatprep.subr.bf16.mxu1 %v1332_v28  ;;  %v409_v62 = vld [vmem:[#allocation7 + $0x230] sm:$0xff]  ;;  %v432_v28 = vld [vmem:[#allocation7 + $0x2e8] sm:$0xff] }
  0x93   :  { %1409 = vmatprep.subr.bf16.mxu0 %v1408_v1  ;;  %v1348_v0 = vpack.c.bf16 %v409_v62, %v406_v61  ;;  %v405_v1 = vld [vmem:[#allocation7 + $0x210] sm:$0xff]  ;;  %v1366_v30 = vpack.c.bf16 %v432_v28, %v429_v27  ;;  %v462_v28 = vld [vmem:[#allocation7 + $0x3d8] sm:$0xff] }
  0x94   :  { %v1350_v5 = vpack.c.bf16 %v408_v2, %v405_v1  ;;  %v441_v61 = vld [vmem:[#allocation7 + $0x330] sm:$0xff]  ;;  %v443_v1 = vld [vmem:[#allocation7 + $0x340] sm:$0xff]  ;;  %v446_v2 = vld [vmem:[#allocation7 + $0x358] sm:$0xff] }
  0x95   :  { %1335 = vmatpush1.bf16.msra.mxu1 %v1334_v35  ;;  %v439_v35 = vld [vmem:[#allocation7 + $0x320] sm:$0xff]  ;;  %v473_v54 = vld [vmem:[#allocation7 + $0x430] sm:$0xff] }
  0x96   :  { %1411 = vmatpush3.bf16.msra.mxu0 %v1410_v10  ;;  %1337 = vmatprep.subr.bf16.mxu1 %v1336_v40  ;;  %v421_v10 = vld [vmem:[#allocation7 + $0x290] sm:$0xff] }
  0x97   :  { %1413 = vmatprep.subr.bf16.mxu0 %v1412_v13  ;;  %v1356_v12 = vpack.c.bf16 %v421_v10, %v418_v9  ;;  %v417_v13 = vld [vmem:[#allocation7 + $0x270] sm:$0xff]  ;;  %v450_v9 = vld [vmem:[#allocation7 + $0x378] sm:$0xff] }
  0x98   :  { %v1358_v17 = vpack.c.bf16 %v420_v14, %v417_v13  ;;  %v449_v10 = vld [vmem:[#allocation7 + $0x370] sm:$0xff]  ;;  %v1655_v14 = vmov 0.0   ;;  %v1378_v15 = vpack.c.bf16 %v450_v9, %v447_v7  ;;  %v785_v9 = vld [vmem:[#allocation8] sm:$0xff] }
  0x99   :  { %1339 = vmatpush1.bf16.msra.mxu1 %v1338_v47  ;;  %v187_v47 = vrot.slane %v1761_v44, %v186_v45  ;;  %v457_v13 = vld [vmem:[#allocation7 + $0x3b0] sm:$0xff] }
  0x9a   :  { %1415 = vmatpush3.bf16.msra.mxu0 %v1414_v22  ;;  %1341 = vmatprep.subr.bf16.mxu1 %v1340_v51  ;;  %v430_v22 = vld [vmem:[#allocation7 + $0x2d8] sm:$0xff] }
  0x9b   :  { %1417 = vmatprep.subr.bf16.mxu0 %v1416_v25  ;;  %v1364_v25 = vpack.c.bf16 %v433_v23, %v430_v22  ;;  %v460_v22 = vld [vmem:[#allocation7 + $0x3c8] sm:$0xff]  ;;  %v463_v23 = vld [vmem:[#allocation7 + $0x3e0] sm:$0xff] }
  0x9c   :  { %v1384_v27 = vpack.c.bf16 %v463_v23, %v460_v22  ;;  %v822_v22 = vld [vmem:[#allocation8 + $0x128] sm:$0xff]  ;;  %v805_v23 = vld [vmem:[#allocation8 + $0xa0] sm:$0xff] }
  0x9d   :  { %1343 = vmatpush1.bf16.msra.mxu1 %v1342_v57  ;;  %v445_v57 = vld [vmem:[#allocation7 + $0x350] sm:$0xff] }
  0x9e   :  { %1419 = vmatpush3.bf16.msra.mxu0 %v1418_v34  ;;  %1345 = vmatprep.subr.bf16.mxu1 %v1344_v58  ;;  %v436_v34 = vld [vmem:[#allocation7 + $0x308] sm:$0xff] }
  0x9f   :  { %1421 = vmatprep.subr.bf16.mxu0 %v1420_v37  ;;  %v1368_v36 = vpack.c.bf16 %v439_v35, %v436_v34  ;;  %v1654_v37 = vmov 0.0|0.0   ;;  %v465_v35 = vld [vmem:[#allocation7 + $0x3f0] sm:$0xff] }
  0xa0   :  { %v1390_v49 = vpack.c.bf16 %v468_v38, %v465_v35  ;;  %v792_v38 = vld [vmem:[#allocation8 + $0x38] sm:$0xff] }
  0xa1   :  { %1347 = vmatpush1.bf16.msra.mxu1 %v1346_v63 }
  0xa2   :  { %1423 = vmatpush3.bf16.msra.mxu0 %v1422_v46  ;;  %1349 = vmatprep.subr.bf16.mxu1 %v1348_v0  ;;  %v183_v46 = vrot.slane %v1761_v44, %v182_v43  ;;  %v444_v0 = vld [vmem:[#allocation7 + $0x348] sm:$0xff] }
  0xa3   :  { %1425 = vmatprep.subr.bf16.mxu0 %v1424_v48 }
  0xa5   :  { %1351 = vmatpush1.bf16.msra.mxu1 %v1350_v5  ;;  %v1374_v5 = vpack.c.bf16 %v444_v0, %v441_v61  ;;  %v477_v61 = vld [vmem:[#allocation7 + $0x450] sm:$0xff]  ;;  %v479_v0 = vld [vmem:[#allocation7 + $0x460] sm:$0xff] }
  0xa6   :  { %1427 = vmatpush3.bf16.msra.mxu0 %v1426_v56  ;;  %1353 = vmatprep.subr.bf16.mxu1 %v1352_v6  ;;  %v442_v56 = vld [vmem:[#allocation7 + $0x338] sm:$0xff]  ;;  %v1436_v6 = vpack.c.bf16 %v446_v2, %v443_v1 }
  0xa7   :  { %1429 = vmatprep.subr.bf16.mxu0 %v1428_v29  ;;  %v1372_v63 = vpack.c.bf16 %v445_v57, %v442_v56  ;;  %v461_v29 = vld [vmem:[#allocation7 + $0x3d0] sm:$0xff]  ;;  %v478_v56 = vld [vmem:[#allocation7 + $0x458] sm:$0xff] }
  0xa8   :  { %v481_v57 = vld [vmem:[#allocation7 + $0x470] sm:$0xff]  ;;  %v482_v1 = vld [vmem:[#allocation7 + $0x478] sm:$0xff] }
  0xa9   :  { %1355 = vmatpush1.bf16.msra.mxu1 %v1354_v11  ;;  %v452_v11 = vld [vmem:[#allocation7 + $0x388] sm:$0xff]  ;;  %v1454_v4 = vpack.c.bf16 %v482_v1, %v479_v0  ;;  %v813_v0 = vld [vmem:[#allocation8 + $0xe0] sm:$0xff] }
  0xaa   :  { %1357 = vmatprep.subr.bf16.mxu1 %v1356_v12  ;;  %1431 = vmatpush3.bf16.msra.mxu0 %v1430_v33  ;;  %v454_v12 = vld [vmem:[#allocation7 + $0x398] sm:$0xff]  ;;  %v1439_v16 = vpack.c.bf16 %v452_v11, %v449_v10  ;;  %v1386_v33 = vpack.c.bf16 %v462_v28, %v459_v26  ;;  %v786_v10 = vld [vmem:[#allocation8 + $0x8] sm:$0xff] }
  0xab   :  { %1432 = vmatprep.subr.bf16.mxu0 %v1654_v37  ;;  %v790_v28 = vld [vmem:[#allocation8 + $0x28] sm:$0xff] }
  0xac   :  { %v814_v1 = vld [vmem:[#allocation8 + $0xe8] sm:$0xff] }
  0xad   :  { %1359 = vmatpush1.bf16.msra.mxu1 %v1358_v17  ;;  %v453_v17 = vld [vmem:[#allocation7 + $0x390] sm:$0xff] }
  0xae   :  { %1361 = vmatprep.subr.bf16.mxu1 %v1360_v18  ;;  %v1380_v18 = vpack.c.bf16 %v457_v13, %v454_v12  ;;  %v1382_v24 = vpack.c.bf16 %v456_v19, %v453_v17  ;;  %v1458_v12 = vpack.c.bf16 %v786_v10, %v785_v9  ;;  %v819_v13 = vld [vmem:[#allocation8 + $0x110] sm:$0xff]  ;;  %v832_v9 = vld [vmem:[#allocation8 + $0x178] sm:$0xff] }
  0xaf   :  { %v787_v19 = vld [vmem:[#allocation8 + $0x10] sm:$0xff] }
  0xb1   :  { %1363 = vmatpush1.bf16.msra.mxu1 %v1362_v21  ;;  %v458_v21 = vld [vmem:[#allocation7 + $0x3b8] sm:$0xff] }
  0xb2   :  { %1365 = vmatprep.subr.bf16.mxu1 %v1364_v25  ;;  %v1442_v25 = vpack.c.bf16 %v458_v21, %v455_v20  ;;  %v788_v20 = vld [vmem:[#allocation8 + $0x18] sm:$0xff]  ;;  %v821_v21 = vld [vmem:[#allocation8 + $0x120] sm:$0xff] }
  0xb5   :  { %1367 = vmatpush1.bf16.msra.mxu1 %v1366_v30  ;;  %v464_v30 = vld [vmem:[#allocation7 + $0x3e8] sm:$0xff] }
  0xb6   :  { %1369 = vmatprep.subr.bf16.mxu1 %v1368_v36  ;;  %v1445_v34 = vpack.c.bf16 %v464_v30, %v461_v29  ;;  %v1388_v36 = vpack.c.bf16 %v469_v32, %v466_v31  ;;  %v1495_v29 = vpack.c.bf16 %v822_v22, %v821_v21  ;;  %v807_v30 = vld [vmem:[#allocation8 + $0xb0] sm:$0xff]  ;;  %v808_v31 = vld [vmem:[#allocation8 + $0xb8] sm:$0xff] }
  0xb7   :  { %v823_v32 = vld [vmem:[#allocation8 + $0x130] sm:$0xff]  ;;  %v1468_v35 = vpack.c.bf16 %v808_v31, %v807_v30 }
 0x14b   :  { %v1031_v40 = vpop.f32.mrb[0].mxu1 }
 0x14c   :  { %v1032_v41 = vpop.f32.mrb[1].mxu1 }
 0x14d   :  { %v1755_v42 = vadd.f32 %v1032_v41, %v1031_v40  ;;  %v467_v40 = vld [vmem:[#allocation7 + $0x400] sm:$0xff]  ;;  %v470_v41 = vld [vmem:[#allocation7 + $0x418] sm:$0xff] }
 0x160   :  { %v261_v48 = vpop.f32.mrb[0].mxu0 }
 0x161   :  { %v262_v50 = vadd.f32 %v261_v48, %v183_v46  ;;  %v263_v51 = vpop.f32.mrb[1].mxu0  ;;  %v472_v46 = vld [vmem:[#allocation7 + $0x428] sm:$0xff]  ;;  %v190_v48 = vsub.s32 2, %v1753_v39  ;;  %v998_v39 = vld [vmem:[%s1825_s6] ss:$0 sm:$0xff] }
 0x162   :  { %v264_v55 = vadd.f32 %v263_v51, %v187_v47  ;;  %v475_v47 = vld [vmem:[#allocation7 + $0x440] sm:$0xff] }
 0x163   :  { %v336_v62 = vmax.f32 %v262_v50, 0.0  ;;  %v1448_v50 = vpack.c.bf16 %v470_v41, %v467_v40  ;;  %v471_v51 = vld [vmem:[#allocation7 + $0x420] sm:$0xff]  ;;  %v1392_v52 = vpack.c.bf16 %v475_v47, %v472_v46  ;;  %v810_v46 = vld [vmem:[#allocation8 + $0xc8] sm:$0xff] }
 0x164   :  { %v337_v58 = vmax.f32 %v264_v55, 0.0  ;;  %v476_v55 = vld [vmem:[#allocation7 + $0x448] sm:$0xff]  ;;  %v809_v41 = vld [vmem:[#allocation8 + $0xc0] sm:$0xff] }
 0x165   :  { %v825_v47 = vld [vmem:[#allocation8 + $0x140] sm:$0xff] }
 0x166   :  { %564 = vmatprep.mubr.f32.mxu1 %v337_v58  ;;  %706 = vmatprep.mubr.f32.mxu0 %v337_v58  ;;  %v191_v58 = vrot.slane %v1761_v44, %v190_v48 }
 0x167   :  { %565 = vmatmul.mubr.f32.vlgmr.msra.gmra.mrb[2].mxu1 %v336_v62  ;;  %707 = vmatmul.mubr.f32.vlgmr.msra.gmra.mrb[2].mxu0 %v336_v62  ;;  %v1396_v62 = vpack.c.bf16 %v481_v57, %v478_v56  ;;  %v812_v56 = vld [vmem:[#allocation8 + $0xd8] sm:$0xff]  ;;  %v827_v57 = vld [vmem:[#allocation8 + $0x150] sm:$0xff] }
 0x168   :  { %1371 = vmatpush1.bf16.msra.mxu1 %v1370_v59  ;;  %1434 = vmatpush3.bf16.msra.mxu0 %v1433_v60  ;;  %v1394_v59 = vpack.c.bf16 %v474_v53, %v471_v51  ;;  %v1451_v60 = vpack.c.bf16 %v476_v55, %v473_v54  ;;  %v333_v2 = vadd.f32 %v1755_v42, %v191_v58  ;;  %v801_v42 = vld [vmem:[#allocation8 + $0x80] sm:$0xff]  ;;  %v794_v53 = vld [vmem:[#allocation8 + $0x48] sm:$0xff]  ;;  %v811_v55 = vld [vmem:[#allocation8 + $0xd0] sm:$0xff] }
 0x169   :  { %1373 = vmatprep.subr.bf16.mxu1 %v1372_v63  ;;  %1435 = vmatprep.subr.bf16.mxu0 %v1654_v37  ;;  %v480_v63 = vld [vmem:[#allocation7 + $0x468] sm:$0xff]  ;;  %v1472_v51 = vpack.c.bf16 %v810_v46, %v809_v41  ;;  %v828_v58 = vld [vmem:[#allocation8 + $0x158] sm:$0xff] }
 0x16a   :  { %635 = vmatprep.mubr.f32.mxu1 %v1655_v14  ;;  %1170 = vmatprep.mubr.msk.f32.mxu0 %vm1656_vm0, %v1655_v14  ;;  %v1398_v3 = vpack.c.bf16 %v480_v63, %v477_v61  ;;  %v338_v44 = vmax.f32 %v333_v2, 0.0  ;;  %v795_v61 = vld [vmem:[#allocation8 + $0x50] sm:$0xff]  ;;  %v1504_v63 = vpack.c.bf16 %v828_v58, %v827_v57  ;;  %v829_v2 = vld [vmem:[#allocation8 + $0x160] sm:$0xff] }
 0x16c   :  { %1375 = vmatpush1.bf16.msra.mxu1 %v1374_v5  ;;  %1437 = vmatpush3.bf16.msra.mxu0 %v1436_v6  ;;  %v817_v5 = vld [vmem:[#allocation8 + $0x100] sm:$0xff]  ;;  %v818_v6 = vld [vmem:[#allocation8 + $0x108] sm:$0xff] }
 0x16d   :  { %1377 = vmatprep.subr.bf16.mxu1 %v1376_v8  ;;  %1438 = vmatprep.subr.bf16.mxu0 %v1654_v37  ;;  %v1489_v7 = vpack.c.bf16 %v818_v6, %v817_v5  ;;  %v802_v8 = vld [vmem:[#allocation8 + $0x88] sm:$0xff]  ;;  %v797_v6 = vld [vmem:[#allocation8 + $0x60] sm:$0xff] }
 0x16e   :  { %v1456_v11 = vpack.c.bf16 %v802_v8, %v801_v42  ;;  %v798_v42 = vld [vmem:[#allocation8 + $0x68] sm:$0xff]  ;;  %v831_v8 = vld [vmem:[#allocation8 + $0x170] sm:$0xff] }
 0x16f   :  { %v1510_v10 = vpack.c.bf16 %v832_v9, %v831_v8 }
 0x170   :  { %1379 = vmatpush1.bf16.msra.mxu1 %v1378_v15  ;;  %1440 = vmatpush3.bf16.msra.mxu0 %v1439_v16  ;;  %v820_v15 = vld [vmem:[#allocation8 + $0x118] sm:$0xff]  ;;  %v803_v16 = vld [vmem:[#allocation8 + $0x90] sm:$0xff] }
 0x171   :  { %1381 = vmatprep.subr.bf16.mxu1 %v1380_v18  ;;  %1441 = vmatprep.subr.bf16.mxu0 %v1654_v37  ;;  %v1492_v17 = vpack.c.bf16 %v820_v15, %v819_v13  ;;  %v804_v18 = vld [vmem:[#allocation8 + $0x98] sm:$0xff]  ;;  %v799_v15 = vld [vmem:[#allocation8 + $0x70] sm:$0xff] }
 0x174   :  { %1383 = vmatpush1.bf16.msra.mxu1 %v1382_v24  ;;  %1443 = vmatpush3.bf16.msra.mxu0 %v1442_v25  ;;  %v1462_v24 = vpack.c.bf16 %v788_v20, %v787_v19  ;;  %v806_v25 = vld [vmem:[#allocation8 + $0xa8] sm:$0xff] }
 0x175   :  { %1385 = vmatprep.subr.bf16.mxu1 %v1384_v27  ;;  %1444 = vmatprep.subr.bf16.mxu0 %v1654_v37  ;;  %v1464_v26 = vpack.c.bf16 %v806_v25, %v805_v23  ;;  %v789_v27 = vld [vmem:[#allocation8 + $0x20] sm:$0xff] }
 0x178   :  { %1387 = vmatpush1.bf16.msra.mxu1 %v1386_v33  ;;  %1446 = vmatpush3.bf16.msra.mxu0 %v1445_v34  ;;  %v824_v33 = vld [vmem:[#allocation8 + $0x138] sm:$0xff]  ;;  %v1466_v34 = vpack.c.bf16 %v790_v28, %v789_v27 }
 0x179   :  { %1389 = vmatprep.subr.bf16.mxu1 %v1388_v36  ;;  %1447 = vmatprep.subr.bf16.mxu0 %v1654_v37  ;;  %v791_v36 = vld [vmem:[#allocation8 + $0x30] sm:$0xff]  ;;  %v1498_v40 = vpack.c.bf16 %v824_v33, %v823_v32 }
 0x17c   :  { %1391 = vmatpush1.bf16.msra.mxu1 %v1390_v49  ;;  %1449 = vmatpush3.bf16.msra.mxu0 %v1448_v50  ;;  %v826_v49 = vld [vmem:[#allocation8 + $0x148] sm:$0xff]  ;;  %v1470_v50 = vpack.c.bf16 %v792_v38, %v791_v36 }
 0x17d   :  { %1393 = vmatprep.subr.bf16.mxu1 %v1392_v52  ;;  %1450 = vmatprep.subr.bf16.mxu0 %v1654_v37  ;;  %v793_v52 = vld [vmem:[#allocation8 + $0x40] sm:$0xff]  ;;  %v1501_v54 = vpack.c.bf16 %v826_v49, %v825_v47 }
 0x180   :  { %1395 = vmatpush1.bf16.msra.mxu1 %v1394_v59  ;;  %1452 = vmatpush3.bf16.msra.mxu0 %v1451_v60  ;;  %v1474_v59 = vpack.c.bf16 %v794_v53, %v793_v52  ;;  %v1476_v60 = vpack.c.bf16 %v812_v56, %v811_v55 }
 0x181   :  { %1397 = vmatprep.subr.bf16.mxu1 %v1396_v62  ;;  %1453 = vmatprep.subr.bf16.mxu0 %v1654_v37  ;;  %v796_v62 = vld [vmem:[#allocation8 + $0x58] sm:$0xff] }
 0x184   :  { %1399 = vmatpush1.bf16.msra.mxu1 %v1398_v3  ;;  %1455 = vmatpush3.bf16.msra.mxu0 %v1454_v4  ;;  %v830_v3 = vld [vmem:[#allocation8 + $0x168] sm:$0xff]  ;;  %v1478_v4 = vpack.c.bf16 %v796_v62, %v795_v61 }
 0x185   :  { %1488 = vmatprep.subr.bf16.mxu1 %v1654_v37  ;;  %1457 = vmatprep.subr.bf16.mxu0 %v1456_v11  ;;  %v1507_v5 = vpack.c.bf16 %v830_v3, %v829_v2  ;;  %v815_v11 = vld [vmem:[#allocation8 + $0xf0] sm:$0xff] }
 0x187   :  { %636 = vmatmul.mubr.f32.vlgmr.msra.gmra.mrb[2].mxu1 %v338_v44  ;;  %1171 = vmatmul.mubr.f32.vlgmr.msra.gmra.mrb[4].mxu0 %v338_v44  ;;  %v1480_v44 = vpack.c.bf16 %v814_v1, %v813_v0 }
 0x188   :  { %1205 = vmatprep.mubr.msk.f32.mxu1 %vm1656_vm0, %v1655_v14  ;;  %1490 = vmatpush3.bf16.msra.mxu1 %v1489_v7  ;;  %v1460_v14 = vpack.c.bf16 %v804_v18, %v803_v16  ;;  %v1482_v7 = vpack.c.bf16 %v798_v42, %v797_v6  ;;  %v800_v16 = vld [vmem:[#allocation8 + $0x78] sm:$0xff] }
 0x189   :  { %1491 = vmatprep.subr.bf16.mxu1 %v1654_v37  ;;  %1459 = vmatpush3.bf16.msra.mxu0 %v1458_v12  ;;  %v816_v12 = vld [vmem:[#allocation8 + $0xf8] sm:$0xff] }
 0x18a   :  { %1461 = vmatprep.subr.bf16.mxu0 %v1460_v14  ;;  %v1484_v13 = vpack.c.bf16 %v816_v12, %v815_v11 }
 0x18c   :  { %1493 = vmatpush3.bf16.msra.mxu1 %v1492_v17  ;;  %v1486_v17 = vpack.c.bf16 %v800_v16, %v799_v15 }
 0x18d   :  { %1494 = vmatprep.subr.bf16.mxu1 %v1654_v37  ;;  %1463 = vmatpush3.bf16.msra.mxu0 %v1462_v24 }
 0x18e   :  { %1465 = vmatprep.subr.bf16.mxu0 %v1464_v26 }
 0x190   :  { %1496 = vmatpush3.bf16.msra.mxu1 %v1495_v29 }
 0x191   :  { %1497 = vmatprep.subr.bf16.mxu1 %v1654_v37  ;;  %1467 = vmatpush3.bf16.msra.mxu0 %v1466_v34 }
 0x192   :  { %1469 = vmatprep.subr.bf16.mxu0 %v1468_v35 }
 0x194   :  { %1499 = vmatpush3.bf16.msra.mxu1 %v1498_v40 }
 0x195   :  { %1500 = vmatprep.subr.bf16.mxu1 %v1654_v37  ;;  %1471 = vmatpush3.bf16.msra.mxu0 %v1470_v50 }
 0x196   :  { %1473 = vmatprep.subr.bf16.mxu0 %v1472_v51 }
 0x198   :  { %1502 = vmatpush3.bf16.msra.mxu1 %v1501_v54 }
 0x199   :  { %1503 = vmatprep.subr.bf16.mxu1 %v1654_v37  ;;  %1475 = vmatpush3.bf16.msra.mxu0 %v1474_v59 }
 0x19a   :  { %1477 = vmatprep.subr.bf16.mxu0 %v1476_v60 }
 0x19c   :  { %1505 = vmatpush3.bf16.msra.mxu1 %v1504_v63 }
 0x19d   :  { %1506 = vmatprep.subr.bf16.mxu1 %v1654_v37  ;;  %1479 = vmatpush3.bf16.msra.mxu0 %v1478_v4 }
 0x19e   :  { %1481 = vmatprep.subr.bf16.mxu0 %v1480_v44 }
 0x1a0   :  { %1508 = vmatpush3.bf16.msra.mxu1 %v1507_v5 }
 0x1a1   :  { %1509 = vmatprep.subr.bf16.mxu1 %v1654_v37  ;;  %1483 = vmatpush3.bf16.msra.mxu0 %v1482_v7  ;;  %v483_v37 = vld [vmem:[%s1823_s4] sm:$0x7] }
 0x1a2   :  { %1485 = vmatprep.subr.bf16.mxu0 %v1484_v13  ;;  %v496_v14 = vrot.slane %v483_v37, %v190_v48  ;;  %v488_v21 = vrot.slane %v483_v37, %v182_v43  ;;  %v492_v22 = vrot.slane %v483_v37, %v186_v45 }
 0x1a4   :  { %1511 = vmatpush3.bf16.msra.mxu1 %v1510_v10 }
 0x1a5   :  { %1487 = vmatpush3.bf16.msra.mxu0 %v1486_v17 }
 0x23a   :  { %v1066_v18 = vpop.f32.mrb[2].mxu0 }
 0x23b   :  { %v1067_v19 = vpop.f32.mrb[3].mxu0 }
 0x23c   :  { %v1068_v20 = vadd.f32 %v1067_v19, %v1066_v18 }
 0x23e   :  { %v709_v23 = vadd.f32 %v1068_v20, %v496_v14 }
 0x25a   :  { %v637_v24 = vpop.f32.mrb[2].mxu1  ;;  %v778_v25 = vpop.f32.mrb[4].mxu0 }
 0x25b   :  { %v1512_v26 = vadd.f32 %v637_v24, %v488_v21  ;;  %v779_v27 = vadd.f32 %v778_v25, %v709_v23  ;;  %v639_v28 = vpop.f32.mrb[3].mxu1  ;;  %v1172_v29 = vpop.f32.mrb[5].mxu0 }
 0x25c   :  { %v1513_v30 = vadd.f32 %v639_v28, %v492_v22 }
 0x25d   :  { %v784_v31 = vmax.f32 %v779_v27, 0.0  ;;  %v782_v33 = vmax.f32 %v1512_v26, 0.0 }
 0x25e   :  { %v783_v32 = vmax.f32 %v1513_v30, 0.0 }
 0x25f   :  { %1206 = vmatmul.mubr.f32.vlgmr.msra.gmra.mrb[4].mxu1 %v784_v31 }
 0x260   :  { %904 = vmatprep.mubr.f32.mxu0 %v783_v32 }
 0x261   :  { %905 = vmatmul.mubr.f32.vlgmr.msra.gmra.mrb[6].mxu0 %v782_v33 }
 0x332   :  { %v976_v48 = vpop.f32.mrb[4].mxu1 }
 0x333   :  { %v1207_v34 = vpop.f32.mrb[5].mxu1 }
 0x334   :  { %v1118_v43 = vpop.f32.mrb[6].mxu0 }
 0x335   :  { %v1119_v45 = vpop.f32.mrb[7].mxu0 }
 0x336   :  { %v1120_v35 = vadd.f32 %v1119_v45, %v1118_v43 }
 0x338   :  { %v907_v36 = vadd.f32 %v1120_v35, %v998_v39 }
 0x33a   :  { %v977_v38 = vadd.f32 %v976_v48, %v907_v36 }
 0x33c   :  { %980 = vst [vmem:[#allocation10] sm:$0xff] %v977_v38 }
 0x33d   :  { %1627 = shalt.err (!%p1624_p8)
}
 0x33e   :  { %s1628_s13 = scalar_lea.hbm %s1826_s7, 128 }
 0x33f   :  { %p1629_p9 = scmp.ne.s32.totalorder %s1826_s7, %s1628_s13  ;;  %p1632_p10 = scmp.lt.u32.totalorder %s1628_s13, %s1826_s7 }
 0x341   :  { %p1634_p11 = pnand %p1632_p10, %p1629_p9 }
 0x343   :  { %1637 = shalt.err (!%p1634_p11)
}
 0x344   :  { %990 = dma.vmem_to_hbm [thread:$0]  %s988_s30, 128, %s1826_s7, [#allocation4]  }
 0x345   :  { %1644 = dma.done.wait [#allocation4], 128  }
 0x346   :  { %1645 = vsyncadd [#allocation4], 4294967168 }
 0x347   :  { %994 = vsyncpa [#allocation3], 1 }
 0x348   :  { %995 = vsyncpa [#allocation6], 1 }
 0x349   :  { %996 = vsyncpa [#allocation9], 1 }
 0x34a   :  { %997 = vsyncpa [#allocation4], 1 }

</bundles_post_ra>
